<compile_context>
chip_gen: v7x
topology: tpu7x:2x2x1
jax: 0.10.0
libtpu: 0.0.40
codegen_flags: <defaults>
</compile_context>

<pallas_src>
import jax
import jax.numpy as jnp
from jax.experimental import pallas as pl
from jax.experimental.pallas import tpu as pltpu

LN_EPS = 1e-5  # torch.nn.LayerNorm default


def _layernorm(z, gamma, beta):
    mu = jnp.mean(z, axis=-1, keepdims=True)
    var = jnp.mean(jnp.square(z - mu), axis=-1, keepdims=True)
    return (z - mu) * jax.lax.rsqrt(var + LN_EPS) * gamma + beta


def _pick_batch_block(batch, requested=None):
    """Largest divisor of `batch` (<= 8) that keeps the parallel grid axis >= 2."""
    if requested is not None:
        assert batch % requested == 0, (batch, requested)
        return requested
    best = 1
    for tb in range(1, min(batch, 8) + 1):
        if batch % tb == 0 and (batch // tb >= 2 or batch == 1):
            best = tb
    return best


def _is_v5e():
    try:
        kind = jax.devices()[0].device_kind.lower()
    except Exception:
        return False
    return ("v5 lite" in kind) or ("v5e" in kind) or ("v5litepod" in kind)


# --------------------------------- wrapper ------------------------------------


def perceiver_resampler(x, params, *, heads, dim_head, batch_block=None):
    """x: (B, N, dim) float32 -> (B, num_latents, dim_out) float32."""
    B, N, dim = x.shape
    latents = params["latents"]                     # (m, dim_out) f32
    m, dim_out = latents.shape
    layers = params["layers"]
    depth = len(layers)
    inner = heads * dim_head
    scale = dim_head ** (-0.5)
    bf16 = jnp.bfloat16

    TB = _pick_batch_block(B, batch_block)
    n_bblk = B // TB

    # --- host-side weight plumbing: lane-dense 2-D layouts, stacked on depth ---
    wq = jnp.stack([lp["wq"] * scale for lp in layers]).astype(bf16)      # (depth, D, inner)
    wkv = jnp.stack([jnp.concatenate([lp["wk"], lp["wv"]], axis=1)
                     for lp in layers]).astype(bf16)                      # (depth, D, 2*inner)
    wo = jnp.stack([lp["wo"] for lp in layers]).astype(bf16)              # (depth, inner, D)
    ln = jnp.stack([jnp.concatenate(
        [lp["gm"], lp["bm"], lp["gl"], lp["bl"]], axis=0)
        for lp in layers])                                                # (depth, 4, D) f32

    w_proj = params["w_proj"].astype(bf16)          # (dim, D)
    b_proj = params["b_proj"]                       # (1, D) f32
    gf, bf_ = params["gf"], params["bf"]            # (1, D) f32

    # --- per-head views via static lane slices + stack (no lane-split reshape) ---
    def split_heads(t, rows):
        # t: (TB*rows, inner) -> (TB*heads, rows, dim_head); batch order = (tb, h)
        slabs = []
        for tb in range(TB):
            for h in range(heads):
                slabs.append(t[tb * rows:(tb + 1) * rows,
                               h * dim_head:(h + 1) * dim_head])
        return jnp.stack(slabs, axis=0)

    def merge_heads(t):
        # t: (TB*heads, m, dim_head) -> (TB*m, inner)
        per_batch = [jnp.concatenate([t[tb * heads + h] for h in range(heads)],
                                     axis=-1) for tb in range(TB)]
        return per_batch[0] if TB == 1 else jnp.concatenate(per_batch, axis=0)

    # ----------------------------------- kernel --------------------------------

    def kernel(x_ref, lat0_ref, wproj_ref, bproj_ref, ln_ref,
               wq_ref, wkv_ref, wo_ref, gf_ref, bf_ref,
               out_ref, xhat_ref, lat_ref):
        d = pl.program_id(1)

        # ---- once per batch block: input projection + cached media LN stats ----
        @pl.when(d == 0)
        def _init():
            xb = x_ref[...].reshape(TB * N, dim).astype(bf16)
            xp = (jnp.dot(xb, wproj_ref[...], preferred_element_type=jnp.float32)
                  + bproj_ref[...])
            mu = jnp.mean(xp, axis=-1, keepdims=True)
            var = jnp.mean(jnp.square(xp - mu), axis=-1, keepdims=True)
            xhat_ref[...] = ((xp - mu) * jax.lax.rsqrt(var + LN_EPS)).astype(bf16)
            lat0 = lat0_ref[...]
            lat_ref[...] = lat0 if TB == 1 else jnp.concatenate([lat0] * TB, axis=0)

        lnp = ln_ref[...]                                   # (4, D)
        gm, bm = lnp[0:1, :], lnp[1:2, :]
        gl, bl = lnp[2:3, :], lnp[3:4, :]

        # media LN: per-layer affine only, on cached normalized media
        xn = (xhat_ref[...].astype(jnp.float32) * gm + bm).astype(bf16)   # (TB*N, D)
        lat = lat_ref[...]                                                # (TB*m, D) f32
        latn = _layernorm(lat, gl, bl).astype(bf16)

        # fused lane-dense projections (attention scale folded into wq host-side)
        q = jnp.dot(latn, wq_ref[...], preferred_element_type=jnp.float32)
        kv_l = jnp.dot(latn, wkv_ref[...], preferred_element_type=jnp.float32)
        kv_x = jnp.dot(xn, wkv_ref[...], preferred_element_type=jnp.float32)

        qh = split_heads(q.astype(bf16), m)                               # (TB*h, m, dh)
        klh = split_heads(kv_l[:, :inner].astype(bf16), m)
        vlh = split_heads(kv_l[:, inner:].astype(bf16), m)
        kxh = split_heads(kv_x[:, :inner].astype(bf16), N)                # (TB*h, N, dh)
        vxh = split_heads(kv_x[:, inner:].astype(bf16), N)

        sim_x = jnp.einsum('bqd,bkd->bqk', qh, kxh,
                           preferred_element_type=jnp.float32)            # (TB*h, m, N)
        sim_l = jnp.einsum('bqd,bkd->bqk', qh, klh,
                           preferred_element_type=jnp.float32)            # (TB*h, m, m)

        # joint softmax over [media; latents] keys, two chunks, no concat
        mx = jnp.maximum(jnp.max(sim_x, axis=-1, keepdims=True),
                         jnp.max(sim_l, axis=-1, keepdims=True))
        p_x = jnp.exp(sim_x - mx)
        p_l = jnp.exp(sim_l - mx)
        inv = pl.reciprocal(jnp.sum(p_x, axis=-1, keepdims=True)
                            + jnp.sum(p_l, axis=-1, keepdims=True), approx=True)
        a_x = (p_x * inv).astype(bf16)
        a_l = (p_l * inv).astype(bf16)

        oh = (jnp.einsum('bqk,bkd->bqd', a_x, vxh,
                         preferred_element_type=jnp.float32)
              + jnp.einsum('bqk,bkd->bqd', a_l, vlh,
                           preferred_element_type=jnp.float32))           # (TB*h, m, dh)

        # fused output projection: merge heads -> single (TB*m, inner) @ (inner, D)
        o = merge_heads(oh.astype(bf16))
        attn_out = jnp.dot(o, wo_ref[...], preferred_element_type=jnp.float32)
        lat_ref[...] = lat + attn_out

        # ---- after the last layer: final LayerNorm + lane-dense store ----
        @pl.when(d == pl.num_programs(1) - 1)
        def _finalize():
            y = _layernorm(lat_ref[...], gf_ref[...], bf_ref[...])
            out_ref[...] = y.reshape(out_ref.shape).astype(out_ref.dtype)

    # -------------------------------- BlockSpecs --------------------------------

    deep_buffer = _is_v5e()

    def wspec(block_shape, index_map):
        if deep_buffer:
            try:   # 3-deep weight pipelining (v5e): hide DMA behind tiny per-layer compute
                return pl.BlockSpec(block_shape, index_map,
                                    pipeline_mode=pl.Buffered(3))
            except Exception:
                pass
        return pl.BlockSpec(block_shape, index_map)

    def fullspec(a):
        nd = a.ndim
        return pl.BlockSpec(a.shape, lambda bi, d, _nd=nd: (0,) * _nd)

    in_specs = [
        pl.BlockSpec((TB, N, dim), lambda bi, d: (bi, 0, 0)),             # x
        fullspec(latents),                                                # latents
        fullspec(w_proj),                                                 # w_proj
        fullspec(b_proj),                                                 # b_proj
        wspec((None, 4, dim_out), lambda bi, d: (d, 0, 0)),               # ln (per layer)
        wspec((None, dim_out, inner), lambda bi, d: (d, 0, 0)),           # wq
        wspec((None, dim_out, 2 * inner), lambda bi, d: (d, 0, 0)),       # wkv
        wspec((None, inner, dim_out), lambda bi, d: (d, 0, 0)),           # wo
        fullspec(gf),
        fullspec(bf_),
    ]
    out_spec = pl.BlockSpec((TB, m, dim_out), lambda bi, d: (bi, 0, 0))

    # --------------------- generation-aware VMEM budget -------------------------

    def nbytes(shape, dtype):
        n = 1
        for s in shape:
            n *= int(s)
        return n * jnp.dtype(dtype).itemsize

    n_buf = 3 if deep_buffer else 2
    resident = (
        2 * nbytes((TB, N, dim), jnp.float32)            # x block
        + 2 * nbytes((m, dim_out), jnp.float32)          # latents
        + 2 * nbytes((dim, dim_out), bf16)               # w_proj
        + 2 * 3 * nbytes((1, dim_out), jnp.float32)      # b_proj / gf / bf
        + n_buf * nbytes((4, dim_out), jnp.float32)      # ln block
        + n_buf * nbytes((dim_out, inner), bf16)         # wq block
        + n_buf * nbytes((dim_out, 2 * inner), bf16)     # wkv block
        + n_buf * nbytes((inner, dim_out), bf16)         # wo block
        + 2 * nbytes((TB, m, dim_out), jnp.float32)      # out block
        + nbytes((TB * N, dim_out), bf16)                # xhat scratch (bf16)
        + nbytes((TB * m, dim_out), jnp.float32))        # lat scratch
    try:
        phys_vmem = int(pltpu.get_tpu_info().vmem_capacity_bytes)
    except Exception:
        phys_vmem = 128 * 1024 * 1024
    vmem_cap = (phys_vmem * 3) // 4          # headroom for Mosaic internal scratch
    vmem_limit = int(min(vmem_cap, max(32 * 1024 * 1024, 4 * resident)))

    return pl.pallas_call(
        kernel,
        out_shape=jax.ShapeDtypeStruct((B, m, dim_out), jnp.float32),
        grid=(n_bblk, depth),
        in_specs=in_specs,
        out_specs=out_spec,
        scratch_shapes=[pltpu.VMEM((TB * N, dim_out), bf16),          # cached normalized media
                        pltpu.VMEM((TB * m, dim_out), jnp.float32)],  # latent residual stream
        compiler_params=pltpu.CompilerParams(
            dimension_semantics=("parallel", "arbitrary"),
            vmem_limit_bytes=vmem_limit),
    )(x, latents, w_proj, b_proj, ln, wq, wkv, wo, gf, bf_)


# ----------------------------- pure-JAX reference ------------------------------


def reference(x, params, *, heads, dim_head):
    B = x.shape[0]
    lat = jnp.broadcast_to(params["latents"], (B,) + params["latents"].shape)
    xp = x @ params["w_proj"] + params["b_proj"]
    inner = heads * dim_head
    scale = dim_head ** (-0.5)
    for lp in params["layers"]:
        xn = _layernorm(xp, lp["gm"], lp["bm"])
        latn = _layernorm(lat, lp["gl"], lp["bl"])
        q = latn @ lp["wq"]
        kv_in = jnp.concatenate([xn, latn], axis=1)
        k = kv_in @ lp["wk"]
        v = kv_in @ lp["wv"]

        def split_heads(t):
            b, n, _ = t.shape
            return t.reshape(b, n, heads, dim_head).transpose(0, 2, 1, 3)

        qh, kh, vh = map(split_heads, (q, k, v))
        qh = qh * scale
        sim = jnp.einsum("bhid,bhjd->bhij", qh, kh)
        sim = sim - jnp.max(sim, axis=-1, keepdims=True)
        attn = jax.nn.softmax(sim, axis=-1)
        o = jnp.einsum("bhij,bhjd->bhid", attn, vh)
        o = o.transpose(0, 2, 1, 3).reshape(B, lat.shape[1], inner)
        lat = o @ lp["wo"] + lat
    return _layernorm(lat, params["gf"], params["bf"])


# ----------------------------------- params ------------------------------------


def make_params(key, *, dim, dim_out, num_latents, heads, dim_head, depth):
    inner = heads * dim_head
    keys = jax.random.split(key, 5 + 8 * depth)
    ki = iter(keys)

    def nrm(k, shape, scl=0.02):
        return jax.random.normal(k, shape, jnp.float32) * scl

    params = {
        "latents": jax.random.normal(next(ki), (num_latents, dim_out), jnp.float32),
        "w_proj": nrm(next(ki), (dim, dim_out)),
        "b_proj": nrm(next(ki), (1, dim_out)),
        "gf": 1.0 + nrm(next(ki), (1, dim_out), 0.1),
        "bf": nrm(next(ki), (1, dim_out), 0.05),
        "layers": [],
    }
    for _ in range(depth):
        params["layers"].append({
            "gm": 1.0 + nrm(next(ki), (1, dim_out), 0.1),
            "bm": nrm(next(ki), (1, dim_out), 0.05),
            "gl": 1.0 + nrm(next(ki), (1, dim_out), 0.1),
            "bl": nrm(next(ki), (1, dim_out), 0.05),
            "wq": nrm(next(ki), (dim_out, inner)),
            "wk": nrm(next(ki), (dim_out, inner)),
            "wv": nrm(next(ki), (dim_out, inner)),
            "wo": nrm(next(ki), (inner, dim_out)),
        })
    return params


# ------------------------------------ main --------------------------------------


if __name__ == "__main__":
    # Small shapes; lane-dense feature dims (dim_out = inner = 128).  B=4 so the
    # batch axis is actually blocked (TB=2) while the parallel grid extent stays 2.
    B, N, dim = 4, 8, 64
    dim_out, num_latents, heads, dim_head, depth = 128, 8, 4, 32, 2

    key = jax.random.PRNGKey(0)
    kx, kp = jax.random.split(key)
    x = jax.random.normal(kx, (B, N, dim), jnp.float32)
    params = make_params(kp, dim=dim, dim_out=dim_out, num_latents=num_latents,
                         heads=heads, dim_head=dim_head, depth=depth)

    out = perceiver_resampler(x, params, heads=heads, dim_head=dim_head)
    out = jax.block_until_ready(out)

    ref = reference(x, params, heads=heads, dim_head=dim_head)
    assert out.shape == (B, num_latents, dim_out)
    max_err = float(jnp.max(jnp.abs(out - ref)))
    # bf16 MXU inputs + bf16 cached media + approx reciprocal => loosened tolerance.
    assert jnp.allclose(out, ref, atol=3e-2, rtol=3e-2), max_err

    print("KERNEL_OK")
</pallas_src>

<mosaic_0001>
module attributes {stable_mosaic.version = 11 : i64} {
  func.func @kernel(%arg0: i32, %arg1: i32, %arg2: memref<2x8x64xf32, #tpu.memory_space<vmem>>, %arg3: memref<8x128xf32, #tpu.memory_space<vmem>>, %arg4: memref<64x128xbf16, #tpu.memory_space<vmem>>, %arg5: memref<1x128xf32, #tpu.memory_space<vmem>>, %arg6: memref<1x4x128xf32, #tpu.memory_space<vmem>>, %arg7: memref<1x128x128xbf16, #tpu.memory_space<vmem>>, %arg8: memref<1x128x256xbf16, #tpu.memory_space<vmem>>, %arg9: memref<1x128x128xbf16, #tpu.memory_space<vmem>>, %arg10: memref<1x128xf32, #tpu.memory_space<vmem>>, %arg11: memref<1x128xf32, #tpu.memory_space<vmem>>, %arg12: memref<2x8x128xf32, #tpu.memory_space<vmem>>, %arg13: memref<16x128xbf16, #tpu.memory_space<vmem>>, %arg14: memref<16x128xf32, #tpu.memory_space<vmem>>) attributes {dimension_semantics = [#tpu.dimension_semantics<parallel>, #tpu.dimension_semantics<arbitrary>], iteration_bounds = array<i64: 2, 2>, scalar_prefetch = 0 : i64, scratch_operands = 2 : i64, tpu.core_type = #tpu.core_type<tc>, window_params = [{transform_indices = @transform_0, window_bounds = array<i64: 2, 8, 64>}, {pipeline_mode = #tpu.pipeline_mode<synchronous>, transform_indices = @transform_1, window_bounds = array<i64: 8, 128>}, {pipeline_mode = #tpu.pipeline_mode<synchronous>, transform_indices = @transform_2, window_bounds = array<i64: 64, 128>}, {pipeline_mode = #tpu.pipeline_mode<synchronous>, transform_indices = @transform_3, window_bounds = array<i64: 1, 128>}, {transform_indices = @transform_4, window_bounds = array<i64: 1, 4, 128>}, {transform_indices = @transform_5, window_bounds = array<i64: 1, 128, 128>}, {transform_indices = @transform_6, window_bounds = array<i64: 1, 128, 256>}, {transform_indices = @transform_7, window_bounds = array<i64: 1, 128, 128>}, {pipeline_mode = #tpu.pipeline_mode<synchronous>, transform_indices = @transform_8, window_bounds = array<i64: 1, 128>}, {pipeline_mode = #tpu.pipeline_mode<synchronous>, transform_indices = @transform_9, window_bounds = array<i64: 1, 128>}, {transform_indices = @transform_10, window_bounds = array<i64: 2, 8, 128>}]} {
    %c0_i32 = arith.constant 0 : i32
    %0 = arith.cmpi eq, %arg1, %c0_i32 : i32
    %1 = arith.extui %0 : i1 to i32
    %c0_i32_0 = arith.constant 0 : i32
    %2 = arith.cmpi ne, %1, %c0_i32_0 : i32
    scf.if %2 {
      %c0_38 = arith.constant 0 : index
      %c0_39 = arith.constant 0 : index
      %c0_40 = arith.constant 0 : index
      %199 = vector.load %arg2[%c0_38, %c0_39, %c0_40] : memref<2x8x64xf32, #tpu.memory_space<vmem>>, vector<2x8x64xf32>
      %200 = vector.shape_cast %199 : vector<2x8x64xf32> to vector<16x64xf32>
      %201 = arith.truncf %200 : vector<16x64xf32> to vector<16x64xbf16>
      %c0_41 = arith.constant 0 : index
      %c0_42 = arith.constant 0 : index
      %202 = vector.load %arg4[%c0_41, %c0_42] : memref<64x128xbf16, #tpu.memory_space<vmem>>, vector<64x128xbf16>
      %cst_43 = arith.constant dense<0.000000e+00> : vector<16x128xf32>
      %203 = tpu.matmul %201, %202, %cst_43 {dimension_numbers = #tpu.dot_dimension_numbers<[1], [0], [0], [1], [0, 0, 1, 1], [], []>} : vector<16x64xbf16>, vector<64x128xbf16>, vector<16x128xf32> -> vector<16x128xf32>
      %c0_44 = arith.constant 0 : index
      %c0_45 = arith.constant 0 : index
      %204 = vector.load %arg5[%c0_44, %c0_45] : memref<1x128xf32, #tpu.memory_space<vmem>>, vector<1x128xf32>
      %205 = vector.broadcast %204 : vector<1x128xf32> to vector<16x128xf32>
      %206 = arith.addf %203, %205 : vector<16x128xf32>
      %cst_46 = arith.constant dense<0.000000e+00> : vector<16xf32>
      %207 = vector.multi_reduction <add>, %206, %cst_46 [1] : vector<16x128xf32> to vector<16xf32>
      %208 = vector.shape_cast %207 : vector<16xf32> to vector<16x1xf32>
      %cst_47 = arith.constant 1.280000e+02 : f32
      %209 = vector.broadcast %cst_47 : f32 to vector<16x1xf32>
      %210 = arith.divf %208, %209 : vector<16x1xf32>
      %211 = vector.broadcast %210 : vector<16x1xf32> to vector<16x128xf32>
      %212 = arith.subf %206, %211 : vector<16x128xf32>
      %213 = arith.mulf %212, %212 : vector<16x128xf32>
      %cst_48 = arith.constant dense<0.000000e+00> : vector<16xf32>
      %214 = vector.multi_reduction <add>, %213, %cst_48 [1] : vector<16x128xf32> to vector<16xf32>
      %215 = vector.shape_cast %214 : vector<16xf32> to vector<16x1xf32>
      %cst_49 = arith.constant 1.280000e+02 : f32
      %216 = vector.broadcast %cst_49 : f32 to vector<16x1xf32>
      %217 = arith.divf %215, %216 : vector<16x1xf32>
      %218 = vector.broadcast %210 : vector<16x1xf32> to vector<16x128xf32>
      %219 = arith.subf %206, %218 : vector<16x128xf32>
      %cst_50 = arith.constant 9.99999974E-6 : f32
      %220 = vector.broadcast %cst_50 : f32 to vector<16x1xf32>
      %221 = arith.addf %217, %220 : vector<16x1xf32>
      %222 = math.rsqrt %221 : vector<16x1xf32>
      %223 = vector.broadcast %222 : vector<16x1xf32> to vector<16x128xf32>
      %224 = arith.mulf %219, %223 : vector<16x128xf32>
      %225 = arith.truncf %224 : vector<16x128xf32> to vector<16x128xbf16>
      %c0_51 = arith.constant 0 : index
      %c0_52 = arith.constant 0 : index
      %226 = vector.load %arg13[%c0_51, %c0_52] : memref<16x128xbf16, #tpu.memory_space<vmem>>, vector<16x128xbf16>
      tpu.vector_store %arg13[%c0_51, %c0_52], %225 {strides = array<i32>} : memref<16x128xbf16, #tpu.memory_space<vmem>>, vector<16x128xbf16>,
      %c0_53 = arith.constant 0 : index
      %c0_54 = arith.constant 0 : index
      %227 = vector.load %arg3[%c0_53, %c0_54] : memref<8x128xf32, #tpu.memory_space<vmem>>, vector<8x128xf32>
      %228 = tpu.concatenate %227, %227 in 0 : vector<8x128xf32>, vector<8x128xf32> -> vector<16x128xf32>
      %c0_55 = arith.constant 0 : index
      %c0_56 = arith.constant 0 : index
      %229 = vector.load %arg14[%c0_55, %c0_56] : memref<16x128xf32, #tpu.memory_space<vmem>>, vector<16x128xf32>
      tpu.vector_store %arg14[%c0_55, %c0_56], %228 {strides = array<i32>} : memref<16x128xf32, #tpu.memory_space<vmem>>, vector<16x128xf32>,
    } else {
    }
    %c0 = arith.constant 0 : index
    %c0_1 = arith.constant 0 : index
    %c0_2 = arith.constant 0 : index
    %3 = vector.load %arg6[%c0, %c0_1, %c0_2] : memref<1x4x128xf32, #tpu.memory_space<vmem>>, vector<1x4x128xf32>
    %4 = vector.shape_cast %3 : vector<1x4x128xf32> to vector<4x128xf32>
    %5 = vector.extract_strided_slice %4 {offsets = [0, 0], sizes = [1, 128], strides = [1, 1]} : vector<4x128xf32> to vector<1x128xf32>
    %6 = vector.extract_strided_slice %4 {offsets = [1, 0], sizes = [1, 128], strides = [1, 1]} : vector<4x128xf32> to vector<1x128xf32>
    %7 = vector.extract_strided_slice %4 {offsets = [2, 0], sizes = [1, 128], strides = [1, 1]} : vector<4x128xf32> to vector<1x128xf32>
    %8 = vector.extract_strided_slice %4 {offsets = [3, 0], sizes = [1, 128], strides = [1, 1]} : vector<4x128xf32> to vector<1x128xf32>
    %c0_3 = arith.constant 0 : index
    %c0_4 = arith.constant 0 : index
    %9 = vector.load %arg13[%c0_3, %c0_4] : memref<16x128xbf16, #tpu.memory_space<vmem>>, vector<16x128xbf16>
    %10 = arith.extf %9 : vector<16x128xbf16> to vector<16x128xf32>
    %11 = vector.broadcast %5 : vector<1x128xf32> to vector<16x128xf32>
    %12 = arith.mulf %10, %11 : vector<16x128xf32>
    %13 = vector.broadcast %6 : vector<1x128xf32> to vector<16x128xf32>
    %14 = arith.addf %12, %13 : vector<16x128xf32>
    %15 = arith.truncf %14 : vector<16x128xf32> to vector<16x128xbf16>
    %c0_5 = arith.constant 0 : index
    %c0_6 = arith.constant 0 : index
    %16 = vector.load %arg14[%c0_5, %c0_6] : memref<16x128xf32, #tpu.memory_space<vmem>>, vector<16x128xf32>
    %cst = arith.constant dense<0.000000e+00> : vector<16xf32>
    %17 = vector.multi_reduction <add>, %16, %cst [1] : vector<16x128xf32> to vector<16xf32>
    %18 = vector.shape_cast %17 : vector<16xf32> to vector<16x1xf32>
    %cst_7 = arith.constant 1.280000e+02 : f32
    %19 = vector.broadcast %cst_7 : f32 to vector<16x1xf32>
    %20 = arith.divf %18, %19 : vector<16x1xf32>
    %21 = vector.broadcast %20 : vector<16x1xf32> to vector<16x128xf32>
    %22 = arith.subf %16, %21 : vector<16x128xf32>
    %23 = arith.mulf %22, %22 : vector<16x128xf32>
    %cst_8 = arith.constant dense<0.000000e+00> : vector<16xf32>
    %24 = vector.multi_reduction <add>, %23, %cst_8 [1] : vector<16x128xf32> to vector<16xf32>
    %25 = vector.shape_cast %24 : vector<16xf32> to vector<16x1xf32>
    %cst_9 = arith.constant 1.280000e+02 : f32
    %26 = vector.broadcast %cst_9 : f32 to vector<16x1xf32>
    %27 = arith.divf %25, %26 : vector<16x1xf32>
    %28 = vector.broadcast %20 : vector<16x1xf32> to vector<16x128xf32>
    %29 = arith.subf %16, %28 : vector<16x128xf32>
    %cst_10 = arith.constant 9.99999974E-6 : f32
    %30 = vector.broadcast %cst_10 : f32 to vector<16x1xf32>
    %31 = arith.addf %27, %30 : vector<16x1xf32>
    %32 = math.rsqrt %31 : vector<16x1xf32>
    %33 = vector.broadcast %32 : vector<16x1xf32> to vector<16x128xf32>
    %34 = arith.mulf %29, %33 : vector<16x128xf32>
    %35 = vector.broadcast %7 : vector<1x128xf32> to vector<16x128xf32>
    %36 = arith.mulf %34, %35 : vector<16x128xf32>
    %37 = vector.broadcast %8 : vector<1x128xf32> to vector<16x128xf32>
    %38 = arith.addf %36, %37 : vector<16x128xf32>
    %39 = arith.truncf %38 : vector<16x128xf32> to vector<16x128xbf16>
    %c0_11 = arith.constant 0 : index
    %c0_12 = arith.constant 0 : index
    %c0_13 = arith.constant 0 : index
    %40 = vector.load %arg7[%c0_11, %c0_12, %c0_13] : memref<1x128x128xbf16, #tpu.memory_space<vmem>>, vector<1x128x128xbf16>
    %41 = vector.shape_cast %40 : vector<1x128x128xbf16> to vector<128x128xbf16>
    %cst_14 = arith.constant dense<0.000000e+00> : vector<16x128xf32>
    %42 = tpu.matmul %39, %41, %cst_14 {dimension_numbers = #tpu.dot_dimension_numbers<[1], [0], [0], [1], [0, 0, 1, 1], [], []>} : vector<16x128xbf16>, vector<128x128xbf16>, vector<16x128xf32> -> vector<16x128xf32>
    %c0_15 = arith.constant 0 : index
    %c0_16 = arith.constant 0 : index
    %c0_17 = arith.constant 0 : index
    %43 = vector.load %arg8[%c0_15, %c0_16, %c0_17] : memref<1x128x256xbf16, #tpu.memory_space<vmem>>, vector<1x128x256xbf16>
    %44 = vector.shape_cast %43 : vector<1x128x256xbf16> to vector<128x256xbf16>
    %cst_18 = arith.constant dense<0.000000e+00> : vector<16x256xf32>
    %45 = tpu.matmul %39, %44, %cst_18 {dimension_numbers = #tpu.dot_dimension_numbers<[1], [0], [0], [1], [0, 0, 1, 1], [], []>} : vector<16x128xbf16>, vector<128x256xbf16>, vector<16x256xf32> -> vector<16x256xf32>
    %c0_19 = arith.constant 0 : index
    %c0_20 = arith.constant 0 : index
    %c0_21 = arith.constant 0 : index
    %46 = vector.load %arg8[%c0_19, %c0_20, %c0_21] : memref<1x128x256xbf16, #tpu.memory_space<vmem>>, vector<1x128x256xbf16>
    %47 = vector.shape_cast %46 : vector<1x128x256xbf16> to vector<128x256xbf16>
    %cst_22 = arith.constant dense<0.000000e+00> : vector<16x256xf32>
    %48 = tpu.matmul %15, %47, %cst_22 {dimension_numbers = #tpu.dot_dimension_numbers<[1], [0], [0], [1], [0, 0, 1, 1], [], []>} : vector<16x128xbf16>, vector<128x256xbf16>, vector<16x256xf32> -> vector<16x256xf32>
    %49 = arith.truncf %42 : vector<16x128xf32> to vector<16x128xbf16>
    %50 = vector.extract_strided_slice %49 {offsets = [0, 0], sizes = [8, 32], strides = [1, 1]} : vector<16x128xbf16> to vector<8x32xbf16>
    %51 = vector.extract_strided_slice %49 {offsets = [0, 32], sizes = [8, 32], strides = [1, 1]} : vector<16x128xbf16> to vector<8x32xbf16>
    %52 = vector.extract_strided_slice %49 {offsets = [0, 64], sizes = [8, 32], strides = [1, 1]} : vector<16x128xbf16> to vector<8x32xbf16>
    %53 = vector.extract_strided_slice %49 {offsets = [0, 96], sizes = [8, 32], strides = [1, 1]} : vector<16x128xbf16> to vector<8x32xbf16>
    %54 = vector.extract_strided_slice %49 {offsets = [8, 0], sizes = [8, 32], strides = [1, 1]} : vector<16x128xbf16> to vector<8x32xbf16>
    %55 = vector.extract_strided_slice %49 {offsets = [8, 32], sizes = [8, 32], strides = [1, 1]} : vector<16x128xbf16> to vector<8x32xbf16>
    %56 = vector.extract_strided_slice %49 {offsets = [8, 64], sizes = [8, 32], strides = [1, 1]} : vector<16x128xbf16> to vector<8x32xbf16>
    %57 = vector.extract_strided_slice %49 {offsets = [8, 96], sizes = [8, 32], strides = [1, 1]} : vector<16x128xbf16> to vector<8x32xbf16>
    %58 = vector.shape_cast %50 : vector<8x32xbf16> to vector<1x8x32xbf16>
    %59 = vector.shape_cast %51 : vector<8x32xbf16> to vector<1x8x32xbf16>
    %60 = vector.shape_cast %52 : vector<8x32xbf16> to vector<1x8x32xbf16>
    %61 = vector.shape_cast %53 : vector<8x32xbf16> to vector<1x8x32xbf16>
    %62 = vector.shape_cast %54 : vector<8x32xbf16> to vector<1x8x32xbf16>
    %63 = vector.shape_cast %55 : vector<8x32xbf16> to vector<1x8x32xbf16>
    %64 = vector.shape_cast %56 : vector<8x32xbf16> to vector<1x8x32xbf16>
    %65 = vector.shape_cast %57 : vector<8x32xbf16> to vector<1x8x32xbf16>
    %66 = tpu.concatenate %58, %59, %60, %61, %62, %63, %64, %65 in 0 : vector<1x8x32xbf16>, vector<1x8x32xbf16>, vector<1x8x32xbf16>, vector<1x8x32xbf16>, vector<1x8x32xbf16>, vector<1x8x32xbf16>, vector<1x8x32xbf16>, vector<1x8x32xbf16> -> vector<8x8x32xbf16>
    %67 = vector.extract_strided_slice %45 {offsets = [0, 0], sizes = [16, 128], strides = [1, 1]} : vector<16x256xf32> to vector<16x128xf32>
    %68 = arith.truncf %67 : vector<16x128xf32> to vector<16x128xbf16>
    %69 = vector.extract_strided_slice %68 {offsets = [0, 0], sizes = [8, 32], strides = [1, 1]} : vector<16x128xbf16> to vector<8x32xbf16>
    %70 = vector.extract_strided_slice %68 {offsets = [0, 32], sizes = [8, 32], strides = [1, 1]} : vector<16x128xbf16> to vector<8x32xbf16>
    %71 = vector.extract_strided_slice %68 {offsets = [0, 64], sizes = [8, 32], strides = [1, 1]} : vector<16x128xbf16> to vector<8x32xbf16>
    %72 = vector.extract_strided_slice %68 {offsets = [0, 96], sizes = [8, 32], strides = [1, 1]} : vector<16x128xbf16> to vector<8x32xbf16>
    %73 = vector.extract_strided_slice %68 {offsets = [8, 0], sizes = [8, 32], strides = [1, 1]} : vector<16x128xbf16> to vector<8x32xbf16>
    %74 = vector.extract_strided_slice %68 {offsets = [8, 32], sizes = [8, 32], strides = [1, 1]} : vector<16x128xbf16> to vector<8x32xbf16>
    %75 = vector.extract_strided_slice %68 {offsets = [8, 64], sizes = [8, 32], strides = [1, 1]} : vector<16x128xbf16> to vector<8x32xbf16>
    %76 = vector.extract_strided_slice %68 {offsets = [8, 96], sizes = [8, 32], strides = [1, 1]} : vector<16x128xbf16> to vector<8x32xbf16>
    %77 = vector.shape_cast %69 : vector<8x32xbf16> to vector<1x8x32xbf16>
    %78 = vector.shape_cast %70 : vector<8x32xbf16> to vector<1x8x32xbf16>
    %79 = vector.shape_cast %71 : vector<8x32xbf16> to vector<1x8x32xbf16>
    %80 = vector.shape_cast %72 : vector<8x32xbf16> to vector<1x8x32xbf16>
    %81 = vector.shape_cast %73 : vector<8x32xbf16> to vector<1x8x32xbf16>
    %82 = vector.shape_cast %74 : vector<8x32xbf16> to vector<1x8x32xbf16>
    %83 = vector.shape_cast %75 : vector<8x32xbf16> to vector<1x8x32xbf16>
    %84 = vector.shape_cast %76 : vector<8x32xbf16> to vector<1x8x32xbf16>
    %85 = tpu.concatenate %77, %78, %79, %80, %81, %82, %83, %84 in 0 : vector<1x8x32xbf16>, vector<1x8x32xbf16>, vector<1x8x32xbf16>, vector<1x8x32xbf16>, vector<1x8x32xbf16>, vector<1x8x32xbf16>, vector<1x8x32xbf16>, vector<1x8x32xbf16> -> vector<8x8x32xbf16>
    %86 = vector.extract_strided_slice %45 {offsets = [0, 128], sizes = [16, 128], strides = [1, 1]} : vector<16x256xf32> to vector<16x128xf32>
    %87 = arith.truncf %86 : vector<16x128xf32> to vector<16x128xbf16>
    %88 = vector.extract_strided_slice %87 {offsets = [0, 0], sizes = [8, 32], strides = [1, 1]} : vector<16x128xbf16> to vector<8x32xbf16>
    %89 = vector.extract_strided_slice %87 {offsets = [0, 32], sizes = [8, 32], strides = [1, 1]} : vector<16x128xbf16> to vector<8x32xbf16>
    %90 = vector.extract_strided_slice %87 {offsets = [0, 64], sizes = [8, 32], strides = [1, 1]} : vector<16x128xbf16> to vector<8x32xbf16>
    %91 = vector.extract_strided_slice %87 {offsets = [0, 96], sizes = [8, 32], strides = [1, 1]} : vector<16x128xbf16> to vector<8x32xbf16>
    %92 = vector.extract_strided_slice %87 {offsets = [8, 0], sizes = [8, 32], strides = [1, 1]} : vector<16x128xbf16> to vector<8x32xbf16>
    %93 = vector.extract_strided_slice %87 {offsets = [8, 32], sizes = [8, 32], strides = [1, 1]} : vector<16x128xbf16> to vector<8x32xbf16>
    %94 = vector.extract_strided_slice %87 {offsets = [8, 64], sizes = [8, 32], strides = [1, 1]} : vector<16x128xbf16> to vector<8x32xbf16>
    %95 = vector.extract_strided_slice %87 {offsets = [8, 96], sizes = [8, 32], strides = [1, 1]} : vector<16x128xbf16> to vector<8x32xbf16>
    %96 = vector.shape_cast %88 : vector<8x32xbf16> to vector<1x8x32xbf16>
    %97 = vector.shape_cast %89 : vector<8x32xbf16> to vector<1x8x32xbf16>
    %98 = vector.shape_cast %90 : vector<8x32xbf16> to vector<1x8x32xbf16>
    %99 = vector.shape_cast %91 : vector<8x32xbf16> to vector<1x8x32xbf16>
    %100 = vector.shape_cast %92 : vector<8x32xbf16> to vector<1x8x32xbf16>
    %101 = vector.shape_cast %93 : vector<8x32xbf16> to vector<1x8x32xbf16>
    %102 = vector.shape_cast %94 : vector<8x32xbf16> to vector<1x8x32xbf16>
    %103 = vector.shape_cast %95 : vector<8x32xbf16> to vector<1x8x32xbf16>
    %104 = tpu.concatenate %96, %97, %98, %99, %100, %101, %102, %103 in 0 : vector<1x8x32xbf16>, vector<1x8x32xbf16>, vector<1x8x32xbf16>, vector<1x8x32xbf16>, vector<1x8x32xbf16>, vector<1x8x32xbf16>, vector<1x8x32xbf16>, vector<1x8x32xbf16> -> vector<8x8x32xbf16>
    %105 = vector.extract_strided_slice %48 {offsets = [0, 0], sizes = [16, 128], strides = [1, 1]} : vector<16x256xf32> to vector<16x128xf32>
    %106 = arith.truncf %105 : vector<16x128xf32> to vector<16x128xbf16>
    %107 = vector.extract_strided_slice %106 {offsets = [0, 0], sizes = [8, 32], strides = [1, 1]} : vector<16x128xbf16> to vector<8x32xbf16>
    %108 = vector.extract_strided_slice %106 {offsets = [0, 32], sizes = [8, 32], strides = [1, 1]} : vector<16x128xbf16> to vector<8x32xbf16>
    %109 = vector.extract_strided_slice %106 {offsets = [0, 64], sizes = [8, 32], strides = [1, 1]} : vector<16x128xbf16> to vector<8x32xbf16>
    %110 = vector.extract_strided_slice %106 {offsets = [0, 96], sizes = [8, 32], strides = [1, 1]} : vector<16x128xbf16> to vector<8x32xbf16>
    %111 = vector.extract_strided_slice %106 {offsets = [8, 0], sizes = [8, 32], strides = [1, 1]} : vector<16x128xbf16> to vector<8x32xbf16>
    %112 = vector.extract_strided_slice %106 {offsets = [8, 32], sizes = [8, 32], strides = [1, 1]} : vector<16x128xbf16> to vector<8x32xbf16>
    %113 = vector.extract_strided_slice %106 {offsets = [8, 64], sizes = [8, 32], strides = [1, 1]} : vector<16x128xbf16> to vector<8x32xbf16>
    %114 = vector.extract_strided_slice %106 {offsets = [8, 96], sizes = [8, 32], strides = [1, 1]} : vector<16x128xbf16> to vector<8x32xbf16>
    %115 = vector.shape_cast %107 : vector<8x32xbf16> to vector<1x8x32xbf16>
    %116 = vector.shape_cast %108 : vector<8x32xbf16> to vector<1x8x32xbf16>
    %117 = vector.shape_cast %109 : vector<8x32xbf16> to vector<1x8x32xbf16>
    %118 = vector.shape_cast %110 : vector<8x32xbf16> to vector<1x8x32xbf16>
    %119 = vector.shape_cast %111 : vector<8x32xbf16> to vector<1x8x32xbf16>
    %120 = vector.shape_cast %112 : vector<8x32xbf16> to vector<1x8x32xbf16>
    %121 = vector.shape_cast %113 : vector<8x32xbf16> to vector<1x8x32xbf16>
    %122 = vector.shape_cast %114 : vector<8x32xbf16> to vector<1x8x32xbf16>
    %123 = tpu.concatenate %115, %116, %117, %118, %119, %120, %121, %122 in 0 : vector<1x8x32xbf16>, vector<1x8x32xbf16>, vector<1x8x32xbf16>, vector<1x8x32xbf16>, vector<1x8x32xbf16>, vector<1x8x32xbf16>, vector<1x8x32xbf16>, vector<1x8x32xbf16> -> vector<8x8x32xbf16>
    %124 = vector.extract_strided_slice %48 {offsets = [0, 128], sizes = [16, 128], strides = [1, 1]} : vector<16x256xf32> to vector<16x128xf32>
    %125 = arith.truncf %124 : vector<16x128xf32> to vector<16x128xbf16>
    %126 = vector.extract_strided_slice %125 {offsets = [0, 0], sizes = [8, 32], strides = [1, 1]} : vector<16x128xbf16> to vector<8x32xbf16>
    %127 = vector.extract_strided_slice %125 {offsets = [0, 32], sizes = [8, 32], strides = [1, 1]} : vector<16x128xbf16> to vector<8x32xbf16>
    %128 = vector.extract_strided_slice %125 {offsets = [0, 64], sizes = [8, 32], strides = [1, 1]} : vector<16x128xbf16> to vector<8x32xbf16>
    %129 = vector.extract_strided_slice %125 {offsets = [0, 96], sizes = [8, 32], strides = [1, 1]} : vector<16x128xbf16> to vector<8x32xbf16>
    %130 = vector.extract_strided_slice %125 {offsets = [8, 0], sizes = [8, 32], strides = [1, 1]} : vector<16x128xbf16> to vector<8x32xbf16>
    %131 = vector.extract_strided_slice %125 {offsets = [8, 32], sizes = [8, 32], strides = [1, 1]} : vector<16x128xbf16> to vector<8x32xbf16>
    %132 = vector.extract_strided_slice %125 {offsets = [8, 64], sizes = [8, 32], strides = [1, 1]} : vector<16x128xbf16> to vector<8x32xbf16>
    %133 = vector.extract_strided_slice %125 {offsets = [8, 96], sizes = [8, 32], strides = [1, 1]} : vector<16x128xbf16> to vector<8x32xbf16>
    %134 = vector.shape_cast %126 : vector<8x32xbf16> to vector<1x8x32xbf16>
    %135 = vector.shape_cast %127 : vector<8x32xbf16> to vector<1x8x32xbf16>
    %136 = vector.shape_cast %128 : vector<8x32xbf16> to vector<1x8x32xbf16>
    %137 = vector.shape_cast %129 : vector<8x32xbf16> to vector<1x8x32xbf16>
    %138 = vector.shape_cast %130 : vector<8x32xbf16> to vector<1x8x32xbf16>
    %139 = vector.shape_cast %131 : vector<8x32xbf16> to vector<1x8x32xbf16>
    %140 = vector.shape_cast %132 : vector<8x32xbf16> to vector<1x8x32xbf16>
    %141 = vector.shape_cast %133 : vector<8x32xbf16> to vector<1x8x32xbf16>
    %142 = tpu.concatenate %134, %135, %136, %137, %138, %139, %140, %141 in 0 : vector<1x8x32xbf16>, vector<1x8x32xbf16>, vector<1x8x32xbf16>, vector<1x8x32xbf16>, vector<1x8x32xbf16>, vector<1x8x32xbf16>, vector<1x8x32xbf16>, vector<1x8x32xbf16> -> vector<8x8x32xbf16>
    "tpu.trace_start"() <{level = 10 : i32, message = "bqd,bkd->bqk"}> : () -> ()
    %cst_23 = arith.constant dense<0.000000e+00> : vector<8x8x8xf32>
    %143 = tpu.matmul %66, %123, %cst_23 {dimension_numbers = #tpu.dot_dimension_numbers<[2], [2], [1], [1], [0, 0, 0, 1, 1, 1], [0], [0]>} : vector<8x8x32xbf16>, vector<8x8x32xbf16>, vector<8x8x8xf32> -> vector<8x8x8xf32>
    %cst_24 = arith.constant dense<0.000000e+00> : vector<8x8x8xf32>
    %144 = tpu.matmul %66, %85, %cst_24 {dimension_numbers = #tpu.dot_dimension_numbers<[2], [2], [1], [1], [0, 0, 0, 1, 1, 1], [0], [0]>} : vector<8x8x32xbf16>, vector<8x8x32xbf16>, vector<8x8x8xf32> -> vector<8x8x8xf32>
    "tpu.trace_stop"() : () -> ()
    %cst_25 = arith.constant dense<0xFF800000> : vector<8x8xf32>
    %145 = vector.multi_reduction <maximumf>, %143, %cst_25 [2] : vector<8x8x8xf32> to vector<8x8xf32>
    %146 = vector.shape_cast %145 : vector<8x8xf32> to vector<8x8x1xf32>
    %cst_26 = arith.constant dense<0xFF800000> : vector<8x8xf32>
    %147 = vector.multi_reduction <maximumf>, %144, %cst_26 [2] : vector<8x8x8xf32> to vector<8x8xf32>
    %148 = vector.shape_cast %147 : vector<8x8xf32> to vector<8x8x1xf32>
    %149 = arith.maximumf %146, %148 : vector<8x8x1xf32>
    %150 = vector.broadcast %149 : vector<8x8x1xf32> to vector<8x8x8xf32>
    %151 = arith.subf %143, %150 : vector<8x8x8xf32>
    %152 = math.exp %151 : vector<8x8x8xf32>
    %153 = vector.broadcast %149 : vector<8x8x1xf32> to vector<8x8x8xf32>
    %154 = arith.subf %144, %153 : vector<8x8x8xf32>
    %155 = math.exp %154 : vector<8x8x8xf32>
    %cst_27 = arith.constant dense<0.000000e+00> : vector<8x8xf32>
    %156 = vector.multi_reduction <add>, %152, %cst_27 [2] : vector<8x8x8xf32> to vector<8x8xf32>
    %157 = vector.shape_cast %156 : vector<8x8xf32> to vector<8x8x1xf32>
    %cst_28 = arith.constant dense<0.000000e+00> : vector<8x8xf32>
    %158 = vector.multi_reduction <add>, %155, %cst_28 [2] : vector<8x8x8xf32> to vector<8x8xf32>
    %159 = vector.shape_cast %158 : vector<8x8xf32> to vector<8x8x1xf32>
    %160 = arith.addf %157, %159 : vector<8x8x1xf32>
    %161 = tpu.reciprocal %160 {approx = true} : vector<8x8x1xf32> -> vector<8x8x1xf32>
    %162 = vector.broadcast %161 : vector<8x8x1xf32> to vector<8x8x8xf32>
    %163 = arith.mulf %152, %162 : vector<8x8x8xf32>
    %164 = arith.truncf %163 : vector<8x8x8xf32> to vector<8x8x8xbf16>
    %165 = vector.broadcast %161 : vector<8x8x1xf32> to vector<8x8x8xf32>
    %166 = arith.mulf %155, %165 : vector<8x8x8xf32>
    %167 = arith.truncf %166 : vector<8x8x8xf32> to vector<8x8x8xbf16>
    "tpu.trace_start"() <{level = 10 : i32, message = "bqk,bkd->bqd"}> : () -> ()
    %cst_29 = arith.constant dense<0.000000e+00> : vector<8x8x32xf32>
    %168 = tpu.matmul %164, %142, %cst_29 {dimension_numbers = #tpu.dot_dimension_numbers<[2], [1], [1], [2], [0, 0, 0, 1, 1, 2], [0], [0]>} : vector<8x8x8xbf16>, vector<8x8x32xbf16>, vector<8x8x32xf32> -> vector<8x8x32xf32>
    %cst_30 = arith.constant dense<0.000000e+00> : vector<8x8x32xf32>
    %169 = tpu.matmul %167, %104, %cst_30 {dimension_numbers = #tpu.dot_dimension_numbers<[2], [1], [1], [2], [0, 0, 0, 1, 1, 2], [0], [0]>} : vector<8x8x8xbf16>, vector<8x8x32xbf16>, vector<8x8x32xf32> -> vector<8x8x32xf32>
    "tpu.trace_stop"() : () -> ()
    %170 = arith.addf %168, %169 : vector<8x8x32xf32>
    %171 = arith.truncf %170 : vector<8x8x32xf32> to vector<8x8x32xbf16>
    %172 = vector.extract_strided_slice %171 {offsets = [0, 0, 0], sizes = [1, 8, 32], strides = [1, 1, 1]} : vector<8x8x32xbf16> to vector<1x8x32xbf16>
    %173 = vector.shape_cast %172 : vector<1x8x32xbf16> to vector<8x32xbf16>
    %174 = vector.extract_strided_slice %171 {offsets = [1, 0, 0], sizes = [1, 8, 32], strides = [1, 1, 1]} : vector<8x8x32xbf16> to vector<1x8x32xbf16>
    %175 = vector.shape_cast %174 : vector<1x8x32xbf16> to vector<8x32xbf16>
    %176 = vector.extract_strided_slice %171 {offsets = [2, 0, 0], sizes = [1, 8, 32], strides = [1, 1, 1]} : vector<8x8x32xbf16> to vector<1x8x32xbf16>
    %177 = vector.shape_cast %176 : vector<1x8x32xbf16> to vector<8x32xbf16>
    %178 = vector.extract_strided_slice %171 {offsets = [3, 0, 0], sizes = [1, 8, 32], strides = [1, 1, 1]} : vector<8x8x32xbf16> to vector<1x8x32xbf16>
    %179 = vector.shape_cast %178 : vector<1x8x32xbf16> to vector<8x32xbf16>
    %180 = tpu.concatenate %173, %175, %177, %179 in 1 : vector<8x32xbf16>, vector<8x32xbf16>, vector<8x32xbf16>, vector<8x32xbf16> -> vector<8x128xbf16>
    %181 = vector.extract_strided_slice %171 {offsets = [4, 0, 0], sizes = [1, 8, 32], strides = [1, 1, 1]} : vector<8x8x32xbf16> to vector<1x8x32xbf16>
    %182 = vector.shape_cast %181 : vector<1x8x32xbf16> to vector<8x32xbf16>
    %183 = vector.extract_strided_slice %171 {offsets = [5, 0, 0], sizes = [1, 8, 32], strides = [1, 1, 1]} : vector<8x8x32xbf16> to vector<1x8x32xbf16>
    %184 = vector.shape_cast %183 : vector<1x8x32xbf16> to vector<8x32xbf16>
    %185 = vector.extract_strided_slice %171 {offsets = [6, 0, 0], sizes = [1, 8, 32], strides = [1, 1, 1]} : vector<8x8x32xbf16> to vector<1x8x32xbf16>
    %186 = vector.shape_cast %185 : vector<1x8x32xbf16> to vector<8x32xbf16>
    %187 = vector.extract_strided_slice %171 {offsets = [7, 0, 0], sizes = [1, 8, 32], strides = [1, 1, 1]} : vector<8x8x32xbf16> to vector<1x8x32xbf16>
    %188 = vector.shape_cast %187 : vector<1x8x32xbf16> to vector<8x32xbf16>
    %189 = tpu.concatenate %182, %184, %186, %188 in 1 : vector<8x32xbf16>, vector<8x32xbf16>, vector<8x32xbf16>, vector<8x32xbf16> -> vector<8x128xbf16>
    %190 = tpu.concatenate %180, %189 in 0 : vector<8x128xbf16>, vector<8x128xbf16> -> vector<16x128xbf16>
    %c0_31 = arith.constant 0 : index
    %c0_32 = arith.constant 0 : index
    %c0_33 = arith.constant 0 : index
    %191 = vector.load %arg9[%c0_31, %c0_32, %c0_33] : memref<1x128x128xbf16, #tpu.memory_space<vmem>>, vector<1x128x128xbf16>
    %192 = vector.shape_cast %191 : vector<1x128x128xbf16> to vector<128x128xbf16>
    %cst_34 = arith.constant dense<0.000000e+00> : vector<16x128xf32>
    %193 = tpu.matmul %190, %192, %cst_34 {dimension_numbers = #tpu.dot_dimension_numbers<[1], [0], [0], [1], [0, 0, 1, 1], [], []>} : vector<16x128xbf16>, vector<128x128xbf16>, vector<16x128xf32> -> vector<16x128xf32>
    %194 = arith.addf %16, %193 : vector<16x128xf32>
    %c0_35 = arith.constant 0 : index
    %c0_36 = arith.constant 0 : index
    %195 = vector.load %arg14[%c0_35, %c0_36] : memref<16x128xf32, #tpu.memory_space<vmem>>, vector<16x128xf32>
    tpu.vector_store %arg14[%c0_35, %c0_36], %194 {strides = array<i32>} : memref<16x128xf32, #tpu.memory_space<vmem>>, vector<16x128xf32>,
    %c1_i32 = arith.constant 1 : i32
    %196 = arith.cmpi eq, %arg1, %c1_i32 : i32
    %197 = arith.extui %196 : i1 to i32
    %c0_i32_37 = arith.constant 0 : i32
    %198 = arith.cmpi ne, %197, %c0_i32_37 : i32
    scf.if %198 {
      %c0_38 = arith.constant 0 : index
      %c0_39 = arith.constant 0 : index
      %199 = vector.load %arg14[%c0_38, %c0_39] : memref<16x128xf32, #tpu.memory_space<vmem>>, vector<16x128xf32>
      %c0_40 = arith.constant 0 : index
      %c0_41 = arith.constant 0 : index
      %200 = vector.load %arg10[%c0_40, %c0_41] : memref<1x128xf32, #tpu.memory_space<vmem>>, vector<1x128xf32>
      %c0_42 = arith.constant 0 : index
      %c0_43 = arith.constant 0 : index
      %201 = vector.load %arg11[%c0_42, %c0_43] : memref<1x128xf32, #tpu.memory_space<vmem>>, vector<1x128xf32>
      %cst_44 = arith.constant dense<0.000000e+00> : vector<16xf32>
      %202 = vector.multi_reduction <add>, %199, %cst_44 [1] : vector<16x128xf32> to vector<16xf32>
      %203 = vector.shape_cast %202 : vector<16xf32> to vector<16x1xf32>
      %cst_45 = arith.constant 1.280000e+02 : f32
      %204 = vector.broadcast %cst_45 : f32 to vector<16x1xf32>
      %205 = arith.divf %203, %204 : vector<16x1xf32>
      %206 = vector.broadcast %205 : vector<16x1xf32> to vector<16x128xf32>
      %207 = arith.subf %199, %206 : vector<16x128xf32>
      %208 = arith.mulf %207, %207 : vector<16x128xf32>
      %cst_46 = arith.constant dense<0.000000e+00> : vector<16xf32>
      %209 = vector.multi_reduction <add>, %208, %cst_46 [1] : vector<16x128xf32> to vector<16xf32>
      %210 = vector.shape_cast %209 : vector<16xf32> to vector<16x1xf32>
      %cst_47 = arith.constant 1.280000e+02 : f32
      %211 = vector.broadcast %cst_47 : f32 to vector<16x1xf32>
      %212 = arith.divf %210, %211 : vector<16x1xf32>
      %213 = vector.broadcast %205 : vector<16x1xf32> to vector<16x128xf32>
      %214 = arith.subf %199, %213 : vector<16x128xf32>
      %cst_48 = arith.constant 9.99999974E-6 : f32
      %215 = vector.broadcast %cst_48 : f32 to vector<16x1xf32>
      %216 = arith.addf %212, %215 : vector<16x1xf32>
      %217 = math.rsqrt %216 : vector<16x1xf32>
      %218 = vector.broadcast %217 : vector<16x1xf32> to vector<16x128xf32>
      %219 = arith.mulf %214, %218 : vector<16x128xf32>
      %220 = vector.broadcast %200 : vector<1x128xf32> to vector<16x128xf32>
      %221 = arith.mulf %219, %220 : vector<16x128xf32>
      %222 = vector.broadcast %201 : vector<1x128xf32> to vector<16x128xf32>
      %223 = arith.addf %221, %222 : vector<16x128xf32>
      %224 = vector.shape_cast %223 : vector<16x128xf32> to vector<2x8x128xf32>
      %c0_49 = arith.constant 0 : index
      %c0_50 = arith.constant 0 : index
      %c0_51 = arith.constant 0 : index
      %225 = vector.load %arg12[%c0_49, %c0_50, %c0_51] : memref<2x8x128xf32, #tpu.memory_space<vmem>>, vector<2x8x128xf32>
      tpu.vector_store %arg12[%c0_49, %c0_50, %c0_51], %224 {strides = array<i32>} : memref<2x8x128xf32, #tpu.memory_space<vmem>>, vector<2x8x128xf32>,
    } else {
    }
    return
  }
  func.func @transform_0(%arg0: i32, %arg1: i32) -> (i32, i32, i32) {
    %c0_i32 = arith.constant 0 : i32
    %c0_i32_0 = arith.constant 0 : i32
    %c0_i32_1 = arith.constant 0 : i32
    return %arg0, %c0_i32, %c0_i32_0 : i32, i32, i32
  }
  func.func @transform_1(%arg0: i32, %arg1: i32) -> (i32, i32) {
    %c0_i32 = arith.constant 0 : i32
    %c0_i32_0 = arith.constant 0 : i32
    %c0_i32_1 = arith.constant 0 : i32
    return %c0_i32, %c0_i32_0 : i32, i32
  }
  func.func @transform_2(%arg0: i32, %arg1: i32) -> (i32, i32) {
    %c0_i32 = arith.constant 0 : i32
    %c0_i32_0 = arith.constant 0 : i32
    %c0_i32_1 = arith.constant 0 : i32
    return %c0_i32, %c0_i32_0 : i32, i32
  }
  func.func @transform_3(%arg0: i32, %arg1: i32) -> (i32, i32) {
    %c0_i32 = arith.constant 0 : i32
    %c0_i32_0 = arith.constant 0 : i32
    %c0_i32_1 = arith.constant 0 : i32
    return %c0_i32, %c0_i32_0 : i32, i32
  }
  func.func @transform_4(%arg0: i32, %arg1: i32) -> (i32, i32, i32) {
    %c0_i32 = arith.constant 0 : i32
    %c0_i32_0 = arith.constant 0 : i32
    %c0_i32_1 = arith.constant 0 : i32
    return %arg1, %c0_i32, %c0_i32_0 : i32, i32, i32
  }
  func.func @transform_5(%arg0: i32, %arg1: i32) -> (i32, i32, i32) {
    %c0_i32 = arith.constant 0 : i32
    %c0_i32_0 = arith.constant 0 : i32
    %c0_i32_1 = arith.constant 0 : i32
    return %arg1, %c0_i32, %c0_i32_0 : i32, i32, i32
  }
  func.func @transform_6(%arg0: i32, %arg1: i32) -> (i32, i32, i32) {
    %c0_i32 = arith.constant 0 : i32
    %c0_i32_0 = arith.constant 0 : i32
    %c0_i32_1 = arith.constant 0 : i32
    return %arg1, %c0_i32, %c0_i32_0 : i32, i32, i32
  }
  func.func @transform_7(%arg0: i32, %arg1: i32) -> (i32, i32, i32) {
    %c0_i32 = arith.constant 0 : i32
    %c0_i32_0 = arith.constant 0 : i32
    %c0_i32_1 = arith.constant 0 : i32
    return %arg1, %c0_i32, %c0_i32_0 : i32, i32, i32
  }
  func.func @transform_8(%arg0: i32, %arg1: i32) -> (i32, i32) {
    %c0_i32 = arith.constant 0 : i32
    %c0_i32_0 = arith.constant 0 : i32
    %c0_i32_1 = arith.constant 0 : i32
    return %c0_i32, %c0_i32_0 : i32, i32
  }
  func.func @transform_9(%arg0: i32, %arg1: i32) -> (i32, i32) {
    %c0_i32 = arith.constant 0 : i32
    %c0_i32_0 = arith.constant 0 : i32
    %c0_i32_1 = arith.constant 0 : i32
    return %c0_i32, %c0_i32_0 : i32, i32
  }
  func.func @transform_10(%arg0: i32, %arg1: i32) -> (i32, i32, i32) {
    %c0_i32 = arith.constant 0 : i32
    %c0_i32_0 = arith.constant 0 : i32
    %c0_i32_1 = arith.constant 0 : i32
    return %arg0, %c0_i32, %c0_i32_0 : i32, i32, i32
  }
}

</mosaic_0001>

<bundles_post_ra>
// kernel: tpu_custom_call.1
= control target key start
LH: loop header
LB: loop body
LE: loop exit
PB: predicated region body
PF: predicated region fallthrough
CT: control target
= control target key end

     0   :  { %s5313_s0 = inlined_call_operand.hbm [shape: f32[4,8,64], index: 0, kind: input, shape index: {}]   ;;  %s5314_s1 = inlined_call_operand.hbm [shape: f32[8,128], index: 1, kind: input, shape index: {}]   ;;  %s5315_s2 = inlined_call_operand.hbm [shape: bf16[64,128], index: 2, kind: input, shape index: {}]   ;;  %s5316_s3 = inlined_call_operand.vmem [shape: f32[1,128], index: 3, kind: input, shape index: {}]   ;;  %s5317_s4 = inlined_call_operand.vmem [shape: f32[2,4,128], index: 4, kind: input, shape index: {}]   ;;  %s5318_s5 = inlined_call_operand.hbm [shape: bf16[2,128,128], index: 5, kind: input, shape index: {}]   ;;  %s5319_s6 = inlined_call_operand.hbm [shape: bf16[2,128,256], index: 6, kind: input, shape index: {}]   ;;  %s5320_s7 = inlined_call_operand.hbm [shape: bf16[2,128,128], index: 7, kind: input, shape index: {}]   ;;  %s5321_s8 = inlined_call_operand.vmem [shape: f32[1,128], index: 8, kind: input, shape index: {}]   ;;  %s5322_s9 = inlined_call_operand.vmem [shape: f32[1,128], index: 9, kind: input, shape index: {}]   ;;  %s5323_s10 = inlined_call_operand.hbm [shape: f32[4,8,128], index: 10, kind: output, shape index: {}]  }
   0x1   :  { %5350 = sst [smem:[#allocation29_spill]] %s5313_s0 }
   0x2   :  { %5351 = sst [smem:[#allocation30_spill]] %s5314_s1 }
   0x3   :  { %5352 = sst [smem:[#allocation31_spill]] %s5315_s2 }
   0x4   :  { %5353 = sst [smem:[#allocation32_spill]] %s5316_s3 }
   0x5   :  { %5354 = sst [smem:[#allocation33_spill]] %s5317_s4 }
   0x6   :  { %5355 = sst [smem:[#allocation34_spill]] %s5318_s5 }
   0x7   :  { %5356 = sst [smem:[#allocation35_spill]] %s5321_s8 }
   0x8   :  { %5357 = sst [smem:[#allocation36_spill]] %s5322_s9 }
   0x9   :  { %5358 = sst [smem:[#allocation37_spill]] %s5323_s10 }
   0xa   :  { %15 = vsyncpa [#allocation5], 0 }
   0xb   :  { %17 = vsyncpa [#allocation5 + $0x1], 0 }
   0xc   :  { %18 = vsyncpa [#allocation8], 0 }
   0xd   :  { %19 = vsyncpa [#allocation11], 0 }
   0xe   :  { %21 = vsyncpa [#allocation11 + $0x1], 0 }
   0xf   :  { %22 = vsyncpa [#allocation14], 0 }
  0x10   :  { %24 = vsyncpa [#allocation14 + $0x1], 0 }
  0x11   :  { %25 = vsyncpa [#allocation6], 0 }
  0x12   :  { %27 = vsyncpa [#allocation6 + $0x1], 0  ;;  %s4260_s13 = smov 0   ;;  %s4262_s14 = smov 0  }
  0x13   :  { %s4264_s15 = smov 0   ;;  %s4266_s16 = smov 0  }
  0x14   :  { %s4268_s17 = smov 0   ;;  %s4270_s18 = smov 0  }
  0x15   :  { %s4272_s19 = smov 0   ;;  %s4274_s20 = smov 0  }
  0x16   :  { %s4276_s21 = smov 0   ;;  %s4278_s22 = smov 0  }
  0x17   :  { %s4280_s23 = smov 0  }
  0x18 LB: > { %5359 = sst [smem:[#allocation21_spill]] %s4150_s15  ;;  %s4314_s24 = sadd.s32 4294967295, %s4182_s23   ;;  %s4182_s23 = sphi %s4280_s23, %s33_s23   ;;  %s4178_s22 = sphi %s4278_s22, %s5426_s22   ;;  %s4174_s21 = sphi %s4276_s21, %s5425_s21   ;;  %s4170_s20 = sphi %s4274_s20, %s5424_s20   ;;  %s4166_s19 = sphi %s4272_s19, %s5423_s19   ;;  %s4162_s18 = sphi %s4270_s18, %s5422_s18   ;;  %s4158_s17 = sphi %s4268_s17, %s5421_s17   ;;  %s4154_s16 = sphi %s4266_s16, %s5420_s16   ;;  %s4150_s15 = sphi %s4264_s15, %s5415_s15   ;;  %s4146_s14 = sphi %s4262_s14, %s5419_s14   ;;  %s4142_s13 = sphi %s4260_s13, %s5418_s13  }
  0x19   : > { %5360 = sst [smem:[#allocation22_spill]] %s4154_s16  ;;  %s3141_s25 = sadd.s32 4294967294, %s4182_s23  }
  0x1a   : > { %5361 = sst [smem:[#allocation23_spill]] %s4166_s19  ;;  %p65_p0 = scmp.ne.s32.totalorder %s4158_s17, %s4154_s16 }
  0x1b   : > { %5362 = sst [smem:[#allocation24_spill]] %s4170_s20  ;;  %p5327_p1 = scmp.eq.s32.totalorder %s4314_s24, 0 }
  0x1c   : > { %p180_p2 = scmp.ne.s32.totalorder %s4146_s14, %s4142_s13  ;;  %p304_p5 = scmp.eq.s32.totalorder %s3141_s25, 3 }
  0x1d   : > { %p4324_p4 = por %p5327_p1, %p65_p0  ;;  %p3142_p7 = scmp.ge.s32.totalorder %s4182_s23, 1 }
  0x1e   : > { %p4330_p6 = por %p180_p2, %p5327_p1  ;;  %p4335_p8 = por %p304_p5, %p65_p0 }
  0x1f   : > { %s5363_s26 = scalar_select %p4324_p4, 1, 0 }
  0x20   : > { %s5364_s27 = scalar_select %p4330_p6, 1, 0 }
  0x21   : > { %s5366_s28 = scalar_select %p4335_p8, 1, 0 }
  0x22   : > { %5365 = sst [smem:[#allocation25_spill]] %s5364_s27  ;;  %p311_p9 = scmp.lt.s32.totalorder %s4182_s23, 5 }
  0x23   : > { %5367 = sst [smem:[#allocation26_spill]] %s5366_s28  ;;  %s4184_s30 = smov [#allocation7]  }
  0x24   : > { %p4340_p10 = pnand %p3142_p7, %p311_p9  ;;  %s324_s11 = sshll.u32 %s4184_s30, 4  ;;  %s325_s11 = int_to_ptr.vmem [resolvable:$true] %s324_s11 }
  0x25   : > { %s42_s13 = sadd.s32 1, %s4174_s21  ;;  %s5371_s1 = sld [smem:[#allocation30_spill]] }
  0x26   : > { %s5368_s29 = scalar_select %p4340_p10, 1, 0 }
  0x27   : > { %p3632_p11 = pneg %p4340_p10  ;;  %p4354_p0 = scmp.ge.s32.totalorder %s42_s13, 2 }
  0x29   : > { %p4348_p12 = pnand %p3632_p11, %p5327_p1 }
  0x2a   : > { %s5370_s25 = scalar_select %p4354_p0, 1, 0 }
  0x2b   : > { %s5369_s12 = scalar_select %p4348_p12, 1, 0 }
  0x2c   : > { %s3872_s30 = scalar_lea.hbm %s5371_s1, 128  ;;  %p5338_p5 = pneg %p4348_p12 }
  0x2d   : > { %p3873_p2 = scmp.ne.s32.totalorder %s5371_s1, %s3872_s30  ;;  %p3879_p11 = scmp.lt.u32.totalorder %s3872_s30, %s5371_s1 }
  0x2f   : > { %p3875_p7 = pnand %p5338_p5, %p3873_p2 }
  0x31   : > { %p3876_p9 = pneg %p3875_p7 }
  0x33   : > { %p3881_p1 = pnand %p3879_p11, %p3876_p9 }
  0x35   : > { %3884 = shalt.err (!%p3881_p1)
}
  0x36   : > { %s3885_s3 = scalar_lea.vmem %s325_s11, 128  ;;  %p3893_p6 = scmp.lt.s32.totalorder %s325_s11, %s325_s11 }
  0x37   : > { %p3886_p3 = scmp.ne.s32.totalorder %s325_s11, %s3885_s3  ;;  %p3894_p4 = scmp.lt.s32.totalorder %s3885_s3, %s3885_s3 }
  0x39   : > { %p3888_p13 = pnand %p3886_p3, %p5338_p5  ;;  %p3895_p10 = por %p3894_p4, %p3893_p6 }
  0x3b   : > { %p3889_p8 = pneg %p3888_p13 }
  0x3d   : > { %p3896_p0 = pnand %p3895_p10, %p3889_p8 }
  0x3f   : > { %3899 = shalt.err (!%p3896_p0)
}
  0x40   : > { %3635 = dma.hbm_to_vmem [thread:$0]  (!%p4348_p12), %s5371_s1, 128, %s325_s11, [#allocation8]  }
  0x41   : > { %p5372_p1 = scmp.ne.s32.totalorder %s5370_s25, 0  ;;  %s167_s3 = sadd.s32 1, %s4150_s15 }
  0x42   : > { %p174_p3 = scmp.ne.s32.totalorder %s4150_s15, %s4146_s14  ;;  %p5374_p6 = scmp.eq.s32.totalorder %s4182_s23, 0 }
  0x43   : > { %s5428_s13 = smov (%p5372_p1, %s42_s13), 0  ;;  %p5337_p10 = scmp.lt.s32.totalorder %s4182_s23, 4 }
  0x44   : > { %5373 = sst [smem:[#allocation27_spill]] %s5428_s13  ;;  %s164_s8 = ssub.s32 %s4174_s21, %s5428_s13 }
  0x45   : > { %p165_p4 = scmp.eq.s32.totalorder %s164_s8, 0  ;;  %p176_p8 = por %p174_p3, %p5374_p6 }
  0x46   : > { %s385_s20 = sand.u32 1, %s4182_s23   ;;  %s4397_s28 = sand.u32 1, %s4150_s15  }
  0x47   : > { %s4393_s9 = scalar_select %p165_p4, %s4150_s15, %s167_s3  }
  0x48   : > { %s5334_s11 = sshll.u32 %s4397_s28, 6  ;;  %s5335_s30 = sshll.u32 %s4174_s21, 10 }
  0x49   : > { %5375 = sst [smem:[#allocation28_spill]] %s4393_s9  ;;  %s5376_s5 = sld [smem:[#allocation34_spill]] }
  0x4a   : > { %s389_s8 = scalar_lea.vmem [#allocation10], %s5334_s11  ;;  %p4414_p13 = pnand %p5337_p10, %p176_p8 }
  0x4b   : > { %s396_s3 = sshll.u32 %s389_s8, 4  ;;  %s4185_s9 = smov [#allocation9]   ;;  %s4410_s3 = int_to_ptr.vmem [resolvable:$true] %s396_s3 }
  0x4c   : > { %s5377_s13 = scalar_select %p4414_p13, 1, 0 }
  0x4d   : > { %s4418_s15 = sshll.u32 %s4185_s9, 4  ;;  %s4420_s10 = scalar_lea.sflag [#allocation11], %s385_s20  ;;  %s335_s15 = int_to_ptr.vmem [resolvable:$true] %s4418_s15 }
  0x4e   : > { %p4426_p2 = pneg %p4414_p13 }
  0x4f   : > { %s4406_s1 = scalar_lea.hbm %s5376_s5, %s5335_s30  ;;  %s3905_s4 = scalar_lea.hbm %s5376_s5, 2048 }
  0x50   : > { %s3900_s16 = scalar_lea.hbm %s4406_s1, 1024  ;;  %p3906_p11 = scmp.lt.u32.totalorder %s4406_s1, %s5376_s5 }
  0x51   : > { %p3901_p0 = scmp.ne.s32.totalorder %s4406_s1, %s3900_s16  ;;  %p3907_p3 = scmp.lt.u32.totalorder %s3905_s4, %s3900_s16 }
  0x52   : > { %s5378_s11 = scalar_select %p4426_p2, 1, 0 }
  0x53   : > { %p3903_p7 = pnand %p4426_p2, %p3901_p0  ;;  %p3908_p4 = por %p3907_p3, %p3906_p11 }
  0x54   : > { %p3909_p6 = scmp.lt.u32.totalorder %s3900_s16, %s4406_s1 }
  0x55   : > { %p3904_p9 = pneg %p3903_p7 }
  0x56   : > { %p3910_p8 = por %p3909_p6, %p3908_p4 }
  0x58   : > { %p3911_p10 = pnand %p3910_p8, %p3904_p9 }
  0x5a   : > { %3914 = shalt.err (!%p3911_p10)
}
  0x5b   : > { %s3915_s20 = scalar_lea.vmem %s4410_s3, 1024  ;;  %s4186_s30 = smov [#allocation10]  }
  0x5c   : > { %p3916_p0 = scmp.ne.s32.totalorder %s4410_s3, %s3915_s20  ;;  %s3920_s8 = sshll.u32 %s4186_s30, 4  ;;  %s3921_s8 = int_to_ptr.vmem [resolvable:$false] %s3920_s8 }
  0x5d   : > { %s3922_s19 = scalar_lea.vmem %s3921_s8, 2048  ;;  %p3923_p1 = scmp.lt.s32.totalorder %s4410_s3, %s3921_s8 }
  0x5e   : > { %p3918_p7 = pnand %p3916_p0, %p4426_p2  ;;  %p3924_p12 = scmp.lt.s32.totalorder %s3922_s19, %s3915_s20 }
  0x60   : > { %p3919_p5 = pneg %p3918_p7  ;;  %p3925_p11 = por %p3924_p12, %p3923_p1 }
  0x62   : > { %p3926_p3 = pnand %p3925_p11, %p3919_p5 }
  0x64   : > { %3929 = shalt.err (!%p3926_p3)
}
  0x65   : > { %s5347_s4 = smov 64   ;;  %s5348_s16 = smov 4  }
  0x66   : > { %3645 = dma.hbm_to_vmem [thread:$0]  (!%p4414_p13), %s4406_s1, 1024, %s4410_s3, %s4420_s10, %s5347_s4, %s5347_s4, %s5348_s16  }
  0x67   : > { %s5379_s2 = sld [smem:[#allocation31_spill]]  ;;  %p5380_p5 = scmp.ne.s32.totalorder %s5369_s12, 0 }
  0x69   : > { %p5381_p1 = pneg %p5380_p5 }
  0x6d   : > { %s3930_s20 = scalar_lea.hbm %s5379_s2, 512 }
  0x6e   : > { %p3931_p12 = scmp.ne.s32.totalorder %s5379_s2, %s3930_s20  ;;  %p3937_p4 = scmp.lt.u32.totalorder %s3930_s20, %s5379_s2 }
  0x70   : > { %p3933_p10 = pnand %p3931_p12, %p5381_p1 }
  0x72   : > { %p3934_p9 = pneg %p3933_p10 }
  0x74   : > { %p3939_p6 = pnand %p3937_p4, %p3934_p9 }
  0x76   : > { %3942 = shalt.err (!%p3939_p6)
}
  0x77   : > { %s3943_s1 = scalar_lea.vmem %s335_s15, 512  ;;  %p5382_p0 = pmov %p5381_p1 }
  0x78   : > { %p3944_p8 = scmp.ne.s32.totalorder %s335_s15, %s3943_s1  ;;  %p3951_p3 = scmp.lt.s32.totalorder %s335_s15, %s335_s15 }
  0x79   : > { %p3952_p13 = scmp.lt.s32.totalorder %s3943_s1, %s3943_s1 }
  0x7a   : > { %p3946_p7 = pnand %p3944_p8, %p5382_p0 }
  0x7b   : > { %p3953_p2 = por %p3952_p13, %p3951_p3 }
  0x7c   : > { %p3947_p11 = pneg %p3946_p7 }
  0x7e   : > { %p3954_p1 = pnand %p3953_p2, %p3947_p11 }
  0x80   : > { %3957 = shalt.err (!%p3954_p1)
}
  0x81   : > { %3638 = dma.hbm_to_vmem [thread:$0]  (!%p5380_p5), %s5379_s2, 512, %s335_s15, [#allocation8], %s5347_s4, %s5347_s4, %s5348_s16  }
  0x82   : > { %s45_s3 = sadd.s32 1, %s4178_s22  ;;  %s52_s12 = sadd.s32 1, %s4162_s18 }
  0x83   : > { %p5383_p13 = scmp.ne.s32.totalorder %s5370_s25, 0  ;;  %p59_p2 = scmp.ne.s32.totalorder %s4162_s18, %s4158_s17 }
  0x84   : > { %s357_s9 = sand.u32 1, %s4162_s18   ;;  %p5384_p10 = scmp.eq.s32.totalorder %s4182_s23, 0 }
  0x85   : > { %s5430_s3 = smov (!%p5383_p13, %s45_s3), %s4178_s22  ;;  %p5385_p4 = scmp.eq.s32.totalorder %s4314_s24, 3 }
  0x86   : > { %p47_p12 = scmp.ge.s32.totalorder %s5430_s3, 2  ;;  %p61_p9 = por %p5384_p10, %p59_p2 }
  0x87   : > { %p4489_p6 = por %p5385_p4, %p59_p2  ;;  %s3146_s15 = sshll.u32 %s357_s9, 4 }
  0x88   : > { %s5432_s3 = smov (%p47_p12, %s5430_s3), 0  ;;  %s3246_s20 = sshll.u32 %s4178_s22, 8 }
  0x89   : > { %s5386_s30 = scalar_select %p4489_p6, 1, 0 }
  0x8a   : > { %s49_s8 = ssub.s32 %s4178_s22, %s5432_s3  ;;  %s5387_s0 = sld [smem:[#allocation29_spill]] }
  0x8b   : > { %p50_p5 = scmp.eq.s32.totalorder %s49_s8, 0  ;;  %s361_s5 = scalar_lea.vmem [#allocation4], %s3146_s15 }
  0x8c   : > { %s368_s27 = sshll.u32 %s361_s5, 4  ;;  %p5388_p8 = scmp.lt.s32.totalorder %s4182_s23, 4  ;;  %s4512_s27 = int_to_ptr.vmem [resolvable:$true] %s368_s27 }
  0x8d   : > { %s4510_s16 = scalar_select %p50_p5, %s4162_s18, %s52_s12  }
  0x8e   : > { %p4505_p0 = pnand %p5388_p8, %p61_p9  ;;  %s4514_s8 = scalar_lea.sflag [#allocation5], %s357_s9 }
  0x90   : > { %s4501_s1 = scalar_lea.hbm %s5387_s0, %s3246_s20  ;;  %p3960_p11 = pneg %p4505_p0 }
  0x91   : > { %s3958_s20 = scalar_lea.hbm %s4501_s1, 256  ;;  %s3963_s19 = scalar_lea.hbm %s5387_s0, 512 }
  0x92   : > { %p3959_p7 = scmp.ne.s32.totalorder %s4501_s1, %s3958_s20  ;;  %p3964_p13 = scmp.lt.u32.totalorder %s4501_s1, %s5387_s0 }
  0x93   : > { %p3965_p2 = scmp.lt.u32.totalorder %s3963_s19, %s3958_s20  ;;  %p3967_p10 = scmp.lt.u32.totalorder %s3958_s20, %s4501_s1 }
  0x94   : > { %p3961_p3 = pnand %p3960_p11, %p3959_p7 }
  0x95   : > { %p3966_p12 = por %p3965_p2, %p3964_p13 }
  0x96   : > { %p3962_p1 = pneg %p3961_p3 }
  0x97   : > { %p3968_p9 = por %p3967_p10, %p3966_p12 }
  0x99   : > { %p3969_p4 = pnand %p3968_p9, %p3962_p1 }
  0x9b   : > { %3972 = shalt.err (!%p3969_p4)
}
  0x9c   : > { %s3973_s12 = scalar_lea.vmem %s4512_s27, 256  ;;  %s4189_s9 = smov [#allocation4]  }
  0x9d   : > { %p3974_p5 = scmp.ne.s32.totalorder %s4512_s27, %s3973_s12  ;;  %s3978_s15 = sshll.u32 %s4189_s9, 4  ;;  %s3979_s15 = int_to_ptr.vmem [resolvable:$false] %s3978_s15 }
  0x9e   : > { %s3980_s2 = scalar_lea.vmem %s3979_s15, 512  ;;  %p3981_p3 = scmp.lt.s32.totalorder %s4512_s27, %s3979_s15 }
  0x9f   : > { %p3976_p8 = pnand %p3974_p5, %p3960_p11  ;;  %p3982_p13 = scmp.lt.s32.totalorder %s3980_s2, %s3973_s12 }
  0xa1   : > { %p3977_p7 = pneg %p3976_p8  ;;  %p3983_p2 = por %p3982_p13, %p3981_p3 }
  0xa3   : > { %p3984_p12 = pnand %p3983_p2, %p3977_p7 }
  0xa5   : > { %3987 = shalt.err (!%p3984_p12)
}
  0xa6   : > { %s4190_s20 = smov 128   ;;  %s4191_s25 = smov 8  }
  0xa7   : > { %3642 = dma.hbm_to_vmem [thread:$0]  (!%p4505_p0), %s4501_s1, 256, %s4512_s27, %s4514_s8, %s4190_s20, %s4190_s20, %s4191_s25  }
  0xa8   : > { %s3152_s19 = sshll.u32 %s4397_s28, 7  ;;  %s3248_s5 = sshll.u32 %s4174_s21, 11 }
  0xa9   : > { %s4550_s15 = scalar_lea.hbm %s5319_s6, %s3248_s5  ;;  %s410_s2 = scalar_lea.vmem [#allocation12], %s3152_s19 }
  0xaa   : > { %s417_s0 = sshll.u32 %s410_s2, 4  ;;  %s3988_s4 = scalar_lea.hbm %s4550_s15, 2048  ;;  %s4552_s0 = int_to_ptr.vmem [resolvable:$true] %s417_s0 }
  0xab   : > { %p3989_p11 = scmp.ne.s32.totalorder %s4550_s15, %s3988_s4  ;;  %p5390_p1 = scmp.ne.s32.totalorder %s5378_s11, 0 }
  0xac   : > { %s3993_s8 = scalar_lea.hbm %s5319_s6, 4096  ;;  %p3994_p9 = scmp.lt.u32.totalorder %s4550_s15, %s5319_s6 }
  0xad   : > { %p3991_p10 = pnand %p3989_p11, %p5390_p1  ;;  %p3995_p4 = scmp.lt.u32.totalorder %s3993_s8, %s3988_s4 }
  0xae   : > { %p3997_p8 = scmp.lt.u32.totalorder %s3988_s4, %s4550_s15 }
  0xaf   : > { %p3992_p0 = pneg %p3991_p10  ;;  %p3996_p5 = por %p3995_p4, %p3994_p9 }
  0xb1   : > { %p3998_p7 = por %p3997_p8, %p3996_p5 }
  0xb3   : > { %p3999_p3 = pnand %p3998_p7, %p3992_p0 }
  0xb5   : > { %4002 = shalt.err (!%p3999_p3)
}
  0xb6   : > { %s4003_s19 = scalar_lea.vmem %s4552_s0, 2048  ;;  %s4192_s9 = smov [#allocation12]  }
  0xb7   : > { %p4004_p13 = scmp.ne.s32.totalorder %s4552_s0, %s4003_s19  ;;  %s4008_s2 = sshll.u32 %s4192_s9, 4  ;;  %s4009_s2 = int_to_ptr.vmem [resolvable:$false] %s4008_s2 }
  0xb8   : > { %s4010_s1 = scalar_lea.vmem %s4009_s2, 4096  ;;  %p4011_p11 = scmp.lt.s32.totalorder %s4552_s0, %s4009_s2 }
  0xb9   : > { %p4006_p2 = pnand %p4004_p13, %p5390_p1  ;;  %p4012_p10 = scmp.lt.s32.totalorder %s4010_s1, %s4003_s19 }
  0xbb   : > { %p4007_p12 = pneg %p4006_p2  ;;  %p4013_p9 = por %p4012_p10, %p4011_p11 }
  0xbd   : > { %p4014_p4 = pnand %p4013_p9, %p4007_p12 }
  0xbf   : > { %4017 = shalt.err (!%p4014_p4)
}
  0xc0   : > { %p5391_p0 = scmp.ne.s32.totalorder %s5377_s13, 0  ;;  %s5392_s4 = sshll.u32 %s4174_s21, 10 }
  0xc1   : > { %s4584_s12 = scalar_lea.hbm %s5320_s7, %s5392_s4  ;;  %s5393_s5 = sshll.u32 %s4397_s28, 6 }
  0xc2   : > { %3648 = dma.hbm_to_vmem [thread:$0]  (!%p5391_p0), %s4550_s15, 2048, %s4552_s0, %s4420_s10, %s4190_s20, %s4190_s20, %s4191_s25  }
  0xc3   : > { %s431_s19 = scalar_lea.vmem [#allocation13], %s5393_s5  ;;  %s428_s2 = scalar_lea.sflag [#allocation14], %s4397_s28 }
  0xc4   : > { %s438_s9 = sshll.u32 %s431_s19, 4  ;;  %s4018_s1 = scalar_lea.hbm %s4584_s12, 1024  ;;  %s4588_s9 = int_to_ptr.vmem [resolvable:$true] %s438_s9 }
  0xc5   : > { %p4019_p5 = scmp.ne.s32.totalorder %s4584_s12, %s4018_s1  ;;  %s4023_s20 = scalar_lea.hbm %s5320_s7, 2048 }
  0xc6   : > { %p4024_p3 = scmp.lt.u32.totalorder %s4584_s12, %s5320_s7  ;;  %p4025_p13 = scmp.lt.u32.totalorder %s4023_s20, %s4018_s1 }
  0xc7   : > { %p4021_p8 = pnand %p4019_p5, %p5390_p1  ;;  %p4027_p12 = scmp.lt.u32.totalorder %s4018_s1, %s4584_s12 }
  0xc8   : > { %p4026_p2 = por %p4025_p13, %p4024_p3 }
  0xc9   : > { %p4022_p7 = pneg %p4021_p8 }
  0xca   : > { %p4028_p11 = por %p4027_p12, %p4026_p2 }
  0xcc   : > { %p4029_p10 = pnand %p4028_p11, %p4022_p7 }
  0xce   : > { %4032 = shalt.err (!%p4029_p10)
}
  0xcf   : > { %s4033_s4 = scalar_lea.vmem %s4588_s9, 1024  ;;  %s4193_s27 = smov [#allocation13]  }
  0xd0   : > { %p4034_p9 = scmp.ne.s32.totalorder %s4588_s9, %s4033_s4  ;;  %s4038_s8 = sshll.u32 %s4193_s27, 4  ;;  %s4039_s8 = int_to_ptr.vmem [resolvable:$false] %s4038_s8 }
  0xd1   : > { %s4040_s5 = scalar_lea.vmem %s4039_s8, 2048  ;;  %p4041_p8 = scmp.lt.s32.totalorder %s4588_s9, %s4039_s8 }
  0xd2   : > { %p4036_p4 = pnand %p4034_p9, %p5390_p1  ;;  %p4042_p6 = scmp.lt.s32.totalorder %s4040_s5, %s4033_s4 }
  0xd4   : > { %p4037_p5 = pneg %p4036_p4  ;;  %p4043_p3 = por %p4042_p6, %p4041_p8 }
  0xd6   : > { %p4044_p13 = pnand %p4043_p3, %p4037_p5 }
  0xd8   : > { %4047 = shalt.err (!%p4044_p13)
}
  0xd9   : > { %s5394_s19 = smov 4   ;;  %s5395_s1 = smov 64  }
  0xda   : > { %3651 = dma.hbm_to_vmem [thread:$0]  (!%p5391_p0), %s4584_s12, 1024, %s4588_s9, %s428_s2, %s5395_s1, %s5395_s1, %s5394_s19  }
  0xdb   : > { %p5396_p1 = scmp.ne.s32.totalorder %s5368_s29, 0 }
  0xdc   : > { %s4620_s11 = sand.u32 (!%p5396_p1), 1, %s4158_s17   ;;  %p5397_p6 = scmp.ne.s32.totalorder (!%p5396_p1), %s5363_s26, 0 }
  0xdd   : > { %450 = sbr.rel (%p5396_p1) target bundleno = 3112 (0xc28), region = 60  ;;  %s3159_s0 = sshll.u32 (!%p5396_p1), %s4620_s11, 4 }
  0xde   : > { %s453_s10 = scalar_lea.sflag (!%p5396_p1), [#allocation5], %s4620_s11  ;;  %s4624_s13 = scalar_lea.vmem (!%p5396_p1), [#allocation4], %s3159_s0 }
  0xe4   : > { %4121 = dma.done.wait (%p5397_p6), %s453_s10, 256  }
  0xe5   : > { %4123 = vsyncadd (%p5397_p6), %s453_s10, 4294967040  ;;  %p5398_p0 = scmp.eq.s32.totalorder %s4314_s24, 0 }
  0xe7   : > { %4125 = dma.done.wait (%p5398_p0), [#allocation8], 640   ;;  %p5399_p7 = pmov %p5398_p0 }
  0xe8   : > { %s5400_s29 = sld [smem:[#allocation25_spill]]  ;;  %s469_s28 = sand.u32 1, %s4314_s24  }
  0xe9   : > { %4127 = vsyncadd (%p5399_p7), [#allocation8], 4294966656  ;;  %s471_s12 = sand.u32 1, %s4146_s14   ;;  %s470_s2 = scalar_lea.sflag [#allocation11], %s469_s28 }
  0xea   : > { %s3162_s9 = sshll.u32 %s471_s12, 6 }
  0xeb   : > { %s4636_s20 = scalar_lea.vmem [#allocation10], %s3162_s9 }
  0xee   : > { %p5401_p2 = scmp.ne.s32.totalorder %s5400_s29, 0 }
  0xf0   : > { %4129 = dma.done.wait (%p5401_p2), %s470_s2, 3072  }
  0xf1   : > { %4131 = vsyncadd (%p5401_p2), %s470_s2, 4294964224  ;;  %s3163_s26 = sshll.u32 %s471_s12, 7  ;;  %s488_s15 = scalar_lea.sflag [#allocation14], %s471_s12 }
  0xf2   : > { %s4642_s25 = scalar_lea.vmem [#allocation12], %s3163_s26  ;;  %s4644_s4 = scalar_lea.vmem [#allocation13], %s3162_s9 }
  0xf3   : > { %4133 = dma.done.wait (%p5401_p2), %s488_s15, 1024  }
  0xf4   : > { %4135 = vsyncadd (%p5401_p2), %s488_s15, 4294966272  ;;  %s5402_s24 = sld [smem:[#allocation23_spill]]  ;;  %s5403_s1 = sld [smem:[#allocation33_spill]] }
  0xf5   : > { %s4657_s28 = scalar_lea.vmem [#allocation15], %s3159_s0 }
  0xfa   : > { %p548_p12 = scmp.lt.s32.totalorder %s5402_s24, 1  ;;  %p3167_p11 = scmp.ne.s32.totalorder %s5402_s24, 0 }
  0xfb   : > { %v3766_v0 = vld [vmem:[#allocation9] sm:$0xff] (!%p3167_p11)   ;;  %v4194_v1 = vmov (!%p3167_p11), 0.0   ;;  %v3767_v2 = vld [vmem:[#allocation9 + $0x8] sm:$0xff] (!%p3167_p11)   ;;  %vm4195_vm0 = vmmov (!%p3167_p11), 0   ;;  %v3768_v3 = vld [vmem:[#allocation9 + $0x10] sm:$0xff] (!%p3167_p11)   ;;  %vm600_vm1 = vcmask (!%p3167_p11), 523264  }
  0xfc   : > { %s549_s27 = scalar_select %p548_p12, %s5402_s24, 1 }
  0xfd   : > { %557 = sbr.rel (%p3167_p11) target bundleno = 797 (0x31d), region = 88  ;;  %3338 = vmatprep.subr.bf16.mxu0 (!%p3167_p11), %v4194_v1  ;;  %3346 = vmatprep.mubr.msk.bf16.mxu0 (!%p3167_p11), %vm4195_vm0, %v4194_v1  ;;  %v3769_v4 = vld [vmem:[#allocation9 + $0x18] sm:$0xff] (!%p3167_p11)   ;;  %v559_v6 = vld [vmem:[%s4624_s13 + $0x8] sm:$0xff] (!%p3167_p11)  ;;  %s5404_s12 = sld [smem:[#allocation32_spill]] (!%p3167_p11) }
  0xfe   : > { %s3166_s8 = sshll.u32 %s549_s27, 2  ;;  %3339 = vmatpush3.bf16.msra.mxu0 (!%p3167_p11), %v3766_v0  ;;  %v558_v5 = vld [vmem:[%s4624_s13] sm:$0xff] (!%p3167_p11) }
  0xff   : > { %s4655_s10 = scalar_lea.vmem %s5403_s1, %s3166_s8  ;;  %3340 = vmatprep.subr.bf16.mxu0 (!%p3167_p11), %v4194_v1  ;;  %v560_v7 = vpack.c.bf16 (!%p3167_p11), %v559_v6, %v558_v5  ;;  %v670_v23 = vld [vmem:[#allocation7] sm:$0xff] (!%p3167_p11) }
 0x100   : > { %671 = vst [vmem:[#allocation3] sm:$0xff] (!%p3167_p11), %v670_v23  ;;  %672 = vst [vmem:[#allocation3 + $0x8] sm:$0xff] (!%p3167_p11), %v670_v23 }
 0x102   : > { %3341 = vmatpush3.bf16.msra.mxu0 (!%p3167_p11), %v3767_v2 }
 0x103   : > { %3342 = vmatprep.subr.bf16.mxu0 (!%p3167_p11), %v4194_v1  ;;  %v3168_v8 = vld [vmem:[%s5404_s12] ss:$0 sm:$0xff] (!%p3167_p11) }
 0x106   : > { %3343 = vmatpush3.bf16.msra.mxu0 %v3768_v3 }
 0x107   : > { %3344 = vmatprep.subr.bf16.mxu0 %v4194_v1 }
 0x10a   : > { %3345 = vmatpush3.bf16.msra.mxu0 %v3769_v4 }
 0x10d   : > { %3347 = vmatmul.mubr.msk.bf16.vlgmr.msra.gmra.mrb[0].mxu0 %vm600_vm1, %v560_v7 }
 0x1e0   : > { %v638_v9 = vpop.f32.mrb[0].mxu0 }
 0x1e1   : > { %v639_v10 = vadd.f32 %v3168_v8, %v638_v9  ;;  %v3348_v11 = vpop.f32.mrb[1].mxu0 }
 0x1e2   : > { %v641_v12 = vpop.f32.mrb[2].mxu0 }
 0x1e3   : > { %645 = vadd.xlane.f32.xlu0 %v639_v10  ;;  %v3349_v13 = vpop.f32.mrb[3].mxu0  ;;  %v642_v14 = vadd.f32 %v3168_v8, %v641_v12 }
 0x1e7   : > { %647 = vadd.xlane.f32.xlu0 %v642_v14 }
 0x270   : > { %v646_v15 = vpop.xlane.xlu0 %645 }
 0x271   : > { %v650_v16 = vmul.f32 0.0078125, %v646_v15 }
 0x273   : > { %v652_v17 = vsub.f32 %v639_v10, %v650_v16 }
 0x274   : > { %v648_v18 = vpop.xlane.xlu0 %647 }
 0x275   : > { %v651_v19 = vmul.f32 0.0078125, %v648_v18  ;;  %v654_v20 = vmul.f32 %v652_v17, %v652_v17 }
 0x277   : > { %v653_v21 = vsub.f32 %v642_v14, %v651_v19  ;;  %656 = vadd.xlane.f32.xlu1 %v654_v20 }
 0x279   : > { %v655_v22 = vmul.f32 %v653_v21, %v653_v21 }
 0x27b   : > { %658 = vadd.xlane.f32.xlu1 %v655_v22 }
 0x304   : > { %v657_v24 = vpop.xlane.xlu1 %656 }
 0x305   : > { %v660_v25 = vmul.f32 0.0078125, %v657_v24 }
 0x307   : > { %v662_v26 = vadd.f32 1e-05, %v660_v25 }
 0x308   : > { %v659_v27 = vpop.xlane.xlu1 %658 }
 0x309   : > { %v661_v28 = vmul.f32 0.0078125, %v659_v27  ;;  %3770 = vrsqrt.f32 %v662_v26 }
 0x30b   : > { %v663_v29 = vadd.f32 1e-05, %v661_v28 }
 0x30d   : > { %3772 = vrsqrt.f32 %v663_v29 }
 0x313   : > { %v3771_v30 = vpop.eup %3770 }
 0x314   : > { %v666_v32 = vmul.f32 %v3771_v30, %v652_v17 }
 0x317   : > { %v3773_v31 = vpop.eup %3772 }
 0x318   : > { %v667_v33 = vmul.f32 %v3773_v31, %v653_v21 }
 0x31a   : > { %v668_v34 = vpack.c.bf16 %v667_v33, %v666_v32 }
 0x31c   : > { %669 = vst [vmem:[#allocation2] sm:$0xff] %v668_v34 }
 0x31d PF: > { %v3774_v37 = vld [vmem:[%s4636_s20] sm:$0xff]   ;;  %v4196_v40 = vmov 0.0   ;;  %v4674_v41 = vld [vmem:[%s4642_s25 + $0x14] ss:$8 sps:$4 sm:$0xff]   ;;  %v3778_v42 = vld [vmem:[%s4636_s20 + $0x8] sm:$0xff]   ;;  %vm4197_vm2 = vmmov 0   ;;  %v677_v11 = vlaneseq }
 0x31e   : > { %v4667_v38 = vld [vmem:[%s4642_s25 + $0x4] ss:$8 sps:$4 sm:$0xff]   ;;  %v4670_v39 = vld [vmem:[%s4642_s25] ss:$8 sps:$4 sm:$0xff]   ;;  %3350 = vmatprep.subr.bf16.mxu0 %v4196_v40  ;;  %v4691_v51 = vld [vmem:[%s4642_s25 + $0x10] ss:$8 sps:$4 sm:$0xff]   ;;  %3366 = vmatprep.mubr.msk.bf16.mxu0 %vm4197_vm2, %v4196_v40 }
 0x31f   : > { %3351 = vmatpush3.bf16.msra.mxu0 %v3774_v37  ;;  %929 = vmatprep.subr.bf16.mxu1 %v4667_v38  ;;  %v3782_v52 = vld [vmem:[%s4636_s20 + $0x10] sm:$0xff]   ;;  %v4696_v53 = vld [vmem:[%s4642_s25 + $0x24] ss:$8 sps:$4 sm:$0xff]   ;;  %v4699_v54 = vld [vmem:[%s4642_s25 + $0x20] ss:$8 sps:$4 sm:$0xff]   ;;  %v4198_v62 = vmov 0  }
 0x320   : > { %v690_v35 = vld [vmem:[#allocation3] sm:$0xff]  ;;  %v691_v36 = vld [vmem:[#allocation3 + $0x8] sm:$0xff]  ;;  %930 = vmatpush1.bf16.msra.mxu1 %v4670_v39  ;;  %3352 = vmatprep.subr.bf16.mxu0 %v4196_v40  ;;  %v3786_v55 = vld [vmem:[%s4636_s20 + $0x18] sm:$0xff]   ;;  %v678_v14 = vshrl.u32 %v677_v11, 7  ;;  %vm1090_vm3 = vcmask 261120   ;;  %s4199_s13 = smov 96  }
 0x321   : > { %692 = vadd.xlane.f32.xlu0 %v690_v35  ;;  %931 = vmatprep.subr.bf16.mxu1 %v4674_v41  ;;  %v4706_v56 = vld [vmem:[%s4642_s25 + $0x34] ss:$8 sps:$4 sm:$0xff]   ;;  %v4709_v57 = vld [vmem:[%s4642_s25 + $0x30] ss:$8 sps:$4 sm:$0xff]   ;;  %v3790_v58 = vld [vmem:[%s4636_s20 + $0x20] sm:$0xff]   ;;  %s4200_s9 = smov 64  }
 0x322   : > { %v4716_v59 = vld [vmem:[%s4642_s25 + $0x44] ss:$8 sps:$4 sm:$0xff]   ;;  %v4719_v60 = vld [vmem:[%s4642_s25 + $0x40] ss:$8 sps:$4 sm:$0xff]   ;;  %v4722_v61 = vld [vmem:[%s4642_s25 + $0x54] ss:$8 sps:$4 sm:$0xff]   ;;  %961 = vmatprep.mubr.bf16.mxu1 %v4198_v62 }
 0x323   : > { %3353 = vmatpush3.bf16.msra.mxu0 %v3778_v42  ;;  %v3794_v63 = vld [vmem:[%s4636_s20 + $0x28] sm:$0xff]   ;;  %v4731_v0 = vld [vmem:[%s4642_s25 + $0x50] ss:$8 sps:$4 sm:$0xff]   ;;  %v3803_v4 = vld [vmem:[%s4642_s25 + $0x74] ss:$8 sps:$4 sm:$0xff]   ;;  %v717_v15 = vsub.s32 2, %v678_v14 }
 0x324   : > { %3354 = vmatprep.subr.bf16.mxu0 %v4196_v40  ;;  %932 = vmatpush1.bf16.msra.mxu1 %v4691_v51  ;;  %v4735_v1 = vld [vmem:[%s4642_s25 + $0x64] ss:$8 sps:$4 sm:$0xff]   ;;  %v3798_v2 = vld [vmem:[%s4636_s20 + $0x30] sm:$0xff]   ;;  %v4741_v3 = vld [vmem:[%s4642_s25 + $0x60] ss:$8 sps:$4 sm:$0xff]   ;;  %v723_v20 = vsub.s32 3, %v678_v14 }
 0x325   : > { %694 = vadd.xlane.f32.xlu0 %v691_v36  ;;  %933 = vmatprep.subr.bf16.mxu1 %v4696_v53  ;;  %v3802_v5 = vld [vmem:[%s4636_s20 + $0x38] sm:$0xff]   ;;  %v673_v16 = vld [vmem:[%s4655_s10] sm:$0xf]  ;;  %v679_v29 = vsub.s32 0, %v678_v14  ;;  %v685_v34 = vsub.s32 1, %v678_v14  ;;  %s4201_s2 = smov 32  }
 0x326   : > { %v3805_v6 = vld [vmem:[%s4642_s25 + $0x70] ss:$8 sps:$4 sm:$0xff]   ;;  %v718_v19 = vrot.slane %v673_v16, %v717_v15  ;;  %v724_v24 = vrot.slane %v673_v16, %v723_v20  ;;  %v674_v30 = vld [vmem:[#allocation2] sm:$0xff]  ;;  %vm2007_vm4 = vcmask 1043456   ;;  %vm1803_vm5 = vcmask 64512   ;;  %s5405_s20 = sld [smem:[#allocation23_spill]] }
 0x327   : > { %3355 = vmatpush3.bf16.msra.mxu0 %v3782_v52  ;;  %v675_v31 = vunpack.c.l.bf16 %v674_v30  ;;  %v676_v32 = vunpack.c.h.bf16 %v674_v30  ;;  %v680_v33 = vrot.slane %v673_v16, %v679_v29  ;;  %v686_v37 = vrot.slane %v673_v16, %v685_v34 }
 0x328   : > { %934 = vmatpush1.bf16.msra.mxu1 %v4699_v54  ;;  %3356 = vmatprep.subr.bf16.mxu0 %v4196_v40  ;;  %vm2761_vm6 = vcmask 523264   ;;  %vm2764_vm7 = vcmask 785408  }
 0x329   : > { %935 = vmatprep.subr.bf16.mxu1 %v4706_v56 }
 0x32b   : > { %3357 = vmatpush3.bf16.msra.mxu0 %v3786_v55 }
 0x32c   : > { %936 = vmatpush1.bf16.msra.mxu1 %v4709_v57  ;;  %3358 = vmatprep.subr.bf16.mxu0 %v4196_v40  ;;  %p3238_p10 = scmp.ne.s32.totalorder %s5405_s20, 1 }
 0x32d   : > { %937 = vmatprep.subr.bf16.mxu1 %v4716_v59  ;;  %s5406_s15 = sld [smem:[#allocation35_spill]] (!%p3238_p10)  ;;  %s5407_s27 = sld [smem:[#allocation36_spill]] (!%p3238_p10) }
 0x32f   : > { %3359 = vmatpush3.bf16.msra.mxu0 %v3790_v58 }
 0x330   : > { %938 = vmatpush1.bf16.msra.mxu1 %v4719_v60  ;;  %3360 = vmatprep.subr.bf16.mxu0 %v4196_v40 }
 0x331   : > { %939 = vmatprep.subr.bf16.mxu1 %v4722_v61 }
 0x333   : > { %3361 = vmatpush3.bf16.msra.mxu0 %v3794_v63 }
 0x334   : > { %940 = vmatpush1.bf16.msra.mxu1 %v4731_v0  ;;  %3362 = vmatprep.subr.bf16.mxu0 %v4196_v40 }
 0x335   : > { %941 = vmatprep.subr.bf16.mxu1 %v4735_v1 }
 0x337   : > { %3363 = vmatpush3.bf16.msra.mxu0 %v3798_v2 }
 0x338   : > { %942 = vmatpush1.bf16.msra.mxu1 %v4741_v3  ;;  %3364 = vmatprep.subr.bf16.mxu0 %v4196_v40 }
 0x339   : > { %943 = vmatprep.subr.bf16.mxu1 %v3803_v4 }
 0x33b   : > { %3365 = vmatpush3.bf16.msra.mxu0 %v3802_v5 }
 0x33c   : > { %944 = vmatpush1.bf16.msra.mxu1 %v3805_v6  ;;  %972 = vmatprep.subr.bf16.mxu0 %v4667_v38 }
 0x33d   : > { %3370 = vmatprep.subr.bf16.mxu1 %v4196_v40 }
 0x3ae   : > { %v693_v43 = vpop.xlane.xlu0 %692 }
 0x3af   : > { %v697_v44 = vmul.f32 0.0078125, %v693_v43 }
 0x3b1   : > { %v4682_v45 = vsub.f32 %v690_v35, %v697_v44  ;;  %v681_v35 = vmul.f32 %v680_v33, %v675_v31 }
 0x3b2   : > { %v695_v46 = vpop.xlane.xlu0 %694 }
 0x3b3   : > { %v698_v47 = vmul.f32 0.0078125, %v695_v46  ;;  %v701_v48 = vmul.f32 %v4682_v45, %v4682_v45  ;;  %v687_v38 = vadd.f32 %v686_v37, %v681_v35 }
 0x3b5   : > { %v4686_v49 = vsub.f32 %v691_v36, %v698_v47  ;;  %703 = vadd.xlane.f32.xlu1 %v701_v48  ;;  %v682_v36 = vmul.f32 %v680_v33, %v676_v32 }
 0x3b7   : > { %v702_v50 = vmul.f32 %v4686_v49, %v4686_v49 }
 0x3b9   : > { %705 = vadd.xlane.f32.xlu1 %v702_v50 }
 0x442   : > { %v704_v7 = vpop.xlane.xlu1 %703 }
 0x443   : > { %v707_v8 = vmul.f32 0.0078125, %v704_v7 }
 0x445   : > { %v709_v9 = vadd.f32 1e-05, %v707_v8 }
 0x446   : > { %v706_v10 = vpop.xlane.xlu1 %705 }
 0x447   : > { %3814 = vrsqrt.f32 %v709_v9  ;;  %v708_v12 = vmul.f32 0.0078125, %v706_v10 }
 0x449   : > { %v710_v13 = vadd.f32 1e-05, %v708_v12 }
 0x44b   : > { %3816 = vrsqrt.f32 %v710_v13 }
 0x451   : > { %v3815_v17 = vpop.eup %3814 }
 0x452   : > { %v713_v18 = vmul.f32 %v3815_v17, %v4682_v45 }
 0x454   : > { %v719_v23 = vmul.f32 %v718_v19, %v713_v18 }
 0x455   : > { %v3817_v21 = vpop.eup %3816 }
 0x456   : > { %v714_v22 = vmul.f32 %v3817_v21, %v4686_v49  ;;  %v725_v26 = vadd.f32 %v724_v24, %v719_v23 }
 0x458   : > { %v720_v25 = vmul.f32 %v718_v19, %v714_v22 }
 0x45a   : > { %v726_v27 = vadd.f32 %v724_v24, %v720_v25 }
 0x45c   : > { %v727_v28 = vpack.c.bf16 %v726_v27, %v725_v26 }
 0x45e   : > { %3367 = vmatmul.mubr.bf16.vlgmr.msra.gmra.mrb[0].mxu0 %v727_v28  ;;  %962 = vmatmul.mubr.bf16.vlgmr.msra.gmra.mrb[0].mxu1 %v727_v28 }
 0x45f   : > { %973 = vmatpush1.bf16.msra.mxu0 %v4670_v39  ;;  %1004 = vmatprep.mubr.bf16.mxu0 %v4198_v62  ;;  %v688_v39 = vadd.f32 %v686_v37, %v682_v36 }
 0x460   : > { %974 = vmatprep.subr.bf16.mxu0 %v4674_v41  ;;  %3372 = vmatprep.mubr.msk.bf16.mxu1 %vm4197_vm2, %v4196_v40 }
 0x461   : > { %v689_v41 = vpack.c.bf16 %v688_v39, %v687_v38 }
 0x463   : > { %975 = vmatpush1.bf16.msra.mxu0 %v4691_v51 }
 0x464   : > { %976 = vmatprep.subr.bf16.mxu0 %v4696_v53 }
 0x467   : > { %977 = vmatpush1.bf16.msra.mxu0 %v4699_v54 }
 0x468   : > { %978 = vmatprep.subr.bf16.mxu0 %v4706_v56 }
 0x46b   : > { %979 = vmatpush1.bf16.msra.mxu0 %v4709_v57 }
 0x46c   : > { %980 = vmatprep.subr.bf16.mxu0 %v4716_v59 }
 0x46f   : > { %981 = vmatpush1.bf16.msra.mxu0 %v4719_v60 }
 0x470   : > { %982 = vmatprep.subr.bf16.mxu0 %v4722_v61 }
 0x473   : > { %983 = vmatpush1.bf16.msra.mxu0 %v4731_v0 }
 0x474   : > { %984 = vmatprep.subr.bf16.mxu0 %v4735_v1 }
 0x477   : > { %985 = vmatpush1.bf16.msra.mxu0 %v4741_v3 }
 0x478   : > { %986 = vmatprep.subr.bf16.mxu0 %v3803_v4 }
 0x47b   : > { %987 = vmatpush1.bf16.msra.mxu0 %v3805_v6 }
 0x47c   : > { %3418 = vmatprep.subr.bf16.mxu0 %v4196_v40 }
 0x47e   : > { %1005 = vmatmul.mubr.bf16.vlgmr.msra.gmra.mrb[4].mxu0 %v689_v41 }
 0x47f   : > { %3420 = vmatprep.mubr.msk.bf16.mxu0 %vm4197_vm2, %v4196_v40 }
 0x531   : > { %v826_v42 = vpop.f32.mrb[0].mxu0  ;;  %v963_v43 = vpop.f32.mrb[0].mxu1 }
 0x532   : > { %v3368_v44 = vpop.f32.mrb[1].mxu0  ;;  %v965_v45 = vpop.f32.mrb[1].mxu1 }
 0x533   : > { %v829_v46 = vpop.f32.mrb[2].mxu0  ;;  %v967_v47 = vpop.f32.mrb[2].mxu1 }
 0x534   : > { %v1015_v48 = vpack.c.bf16 %v829_v46, %v826_v42  ;;  %v1030_v49 = vpack.c.bf16 %v967_v47, %v963_v43  ;;  %v3369_v50 = vpop.f32.mrb[3].mxu0  ;;  %v969_v51 = vpop.f32.mrb[3].mxu1 }
 0x535   : > { %v4772_v52 = vpack.c.bf16 %v969_v51, %v965_v45 }
 0x536   : > { %1017 = vrot.lane.b32.xlu1 %v1015_v48, %s4199_s13  ;;  %v1460_v53 = vsel %vm1090_vm3, %v1030_v49, 0  ;;  %v4793_v62 = vrot.slane %v1015_v48, 4  ;;  %v1038_v63 = vrot.slane %v1030_v49, 4 }
 0x537   : > { %3419 = vmatpush3.bf16.xpose.msra.mxu0 %v1460_v53  ;;  %v2009_v26 = vsel %vm2007_vm4, %v4772_v52, 0 }
 0x538   : > { %3430 = vmatprep.subr.bf16.mxu0 %v4196_v40  ;;  %v1632_v21 = vsel %vm1090_vm3, %v1038_v63, 0 }
 0x53e   : > { %3421 = vmatmul.mubr.msk.bf16.vlgmr.msra.gmra.mrb[8].mxu0 %vm1090_vm3, %v1015_v48 }
 0x53f   : > { %3432 = vmatprep.mubr.msk.bf16.mxu0 %vm4197_vm2, %v4196_v40 }
 0x551   : > { %v1006_v54 = vpop.f32.mrb[4].mxu0 }
 0x552   : > { %v1008_v55 = vpop.f32.mrb[5].mxu0 }
 0x553   : > { %v1010_v56 = vpop.f32.mrb[6].mxu0 }
 0x554   : > { %v1060_v57 = vpack.c.bf16 %v1010_v56, %v1006_v54  ;;  %v1012_v58 = vpop.f32.mrb[7].mxu0 }
 0x555   : > { %v4780_v59 = vpack.c.bf16 %v1012_v58, %v1008_v55 }
 0x556   : > { %1064 = vrot.lane.b32.xlu1 %v1060_v57, %s4200_s9  ;;  %1062 = vrot.lane.b32.xlu0 %v1060_v57, %s4199_s13  ;;  %v1095_v60 = vsel %vm1090_vm3, %v1060_v57, 0  ;;  %v1068_v61 = vrot.slane %v1060_v57, 4 }
 0x557   : > { %3371 = vmatpush3.bf16.xpose.msra.mxu1 %v1095_v60 }
 0x558   : > { %3376 = vmatprep.subr.bf16.mxu1 %v4196_v40  ;;  %v1279_v17 = vsel %vm1090_vm3, %v1068_v61, 0 }
 0x55a   : > { %1019 = vrot.lane.b32.xlu1 %v1015_v48, %s4200_s9  ;;  %1066 = vrot.lane.b32.xlu0 %v1060_v57, %s4201_s2 }
 0x55e   : > { %1021 = vrot.lane.b32.xlu1 %v1015_v48, %s4201_s2  ;;  %3373 = vmatmul.mubr.msk.bf16.vlgmr.msra.gmra.mrb[4].mxu1 %vm1090_vm3, %v1015_v48 }
 0x55f   : > { %1069 = vrot.lane.b32.xlu0 %v1068_v61, %s4199_s13  ;;  %3378 = vmatprep.mubr.msk.bf16.mxu1 %vm4197_vm2, %v4196_v40 }
 0x562   : > { %1024 = vrot.lane.b32.xlu1 %v4793_v62, %s4199_s13 }
 0x563   : > { %1071 = vrot.lane.b32.xlu0 %v1068_v61, %s4200_s9 }
 0x566   : > { %1026 = vrot.lane.b32.xlu1 %v4793_v62, %s4200_s9 }
 0x567   : > { %1073 = vrot.lane.b32.xlu0 %v1068_v61, %s4201_s2 }
 0x56a   : > { %1028 = vrot.lane.b32.xlu1 %v4793_v62, %s4201_s2 }
 0x56b   : > { %1032 = vrot.lane.b32.xlu0 %v1030_v49, %s4199_s13 }
 0x56e   : > { %1034 = vrot.lane.b32.xlu1 %v1030_v49, %s4200_s9 }
 0x56f   : > { %1036 = vrot.lane.b32.xlu0 %v1030_v49, %s4201_s2 }
 0x572   : > { %1039 = vrot.lane.b32.xlu1 %v1038_v63, %s4199_s13 }
 0x573   : > { %1041 = vrot.lane.b32.xlu0 %v1038_v63, %s4200_s9 }
 0x576   : > { %1043 = vrot.lane.b32.xlu1 %v1038_v63, %s4201_s2 }
 0x5a8   : > { %v4809_v0 = vpop.permute.xlu1 %1017 }
 0x5c8   : > { %v1065_v1 = vpop.permute.xlu1 %1064  ;;  %v1063_v2 = vpop.permute.xlu0 %1062 }
 0x5c9   : > { %v1141_v3 = vsel %vm1090_vm3, %v1063_v2, 0  ;;  %v1187_v7 = vsel %vm1090_vm3, %v1065_v1, 0 }
 0x5ca   : > { %3377 = vmatpush3.bf16.xpose.msra.mxu1 %v1141_v3 }
 0x5cb   : > { %3382 = vmatprep.subr.bf16.mxu1 %v4196_v40 }
 0x5cc   : > { %v1020_v4 = vpop.permute.xlu1 %1019  ;;  %v1067_v5 = vpop.permute.xlu0 %1066 }
 0x5cd   : > { %v1233_v12 = vsel %vm1090_vm3, %v1067_v5, 0 }
 0x5d0   : > { %v4813_v6 = vpop.permute.xlu1 %1021 }
 0x5d1   : > { %v1070_v8 = vpop.permute.xlu0 %1069  ;;  %3379 = vmatmul.mubr.msk.bf16.vlgmr.msra.gmra.mrb[8].mxu1 %vm1090_vm3, %v4809_v0 }
 0x5d2   : > { %3383 = vmatpush3.bf16.xpose.msra.mxu1 %v1187_v7  ;;  %3384 = vmatprep.mubr.msk.bf16.mxu1 %vm4197_vm2, %v4196_v40  ;;  %v1325_v20 = vsel %vm1090_vm3, %v1070_v8, 0 }
 0x5d3   : > { %3388 = vmatprep.subr.bf16.mxu1 %v4196_v40 }
 0x5d4   : > { %v4821_v9 = vpop.permute.xlu1 %1024 }
 0x5d5   : > { %v1072_v10 = vpop.permute.xlu0 %1071 }
 0x5d6   : > { %v1371_v23 = vsel %vm1090_vm3, %v1072_v10, 0 }
 0x5d8   : > { %v1027_v11 = vpop.permute.xlu1 %1026 }
 0x5d9   : > { %3385 = vmatmul.mubr.msk.bf16.vlgmr.msra.gmra.mrb[12].mxu1 %vm1090_vm3, %v1020_v4  ;;  %v1074_v13 = vpop.permute.xlu0 %1073 }
 0x5da   : > { %3389 = vmatpush3.bf16.xpose.msra.mxu1 %v1233_v12  ;;  %3390 = vmatprep.mubr.msk.bf16.mxu1 %vm4197_vm2, %v4196_v40  ;;  %v1417_v25 = vsel %vm1090_vm3, %v1074_v13, 0 }
 0x5db   : > { %3394 = vmatprep.subr.bf16.mxu1 %v4196_v40 }
 0x5dc   : > { %v4828_v14 = vpop.permute.xlu1 %1028 }
 0x5dd   : > { %v1033_v18 = vpop.permute.xlu0 %1032 }
 0x5de   : > { %v1503_v27 = vsel %vm1090_vm3, %v1033_v18, 0 }
 0x5e0   : > { %v1035_v15 = vpop.permute.xlu1 %1034 }
 0x5e1   : > { %v1546_v16 = vsel %vm1090_vm3, %v1035_v15, 0  ;;  %3391 = vmatmul.mubr.msk.bf16.vlgmr.msra.gmra.mrb[16].mxu1 %vm1090_vm3, %v4813_v6  ;;  %v1037_v19 = vpop.permute.xlu0 %1036 }
 0x5e2   : > { %3395 = vmatpush3.bf16.xpose.msra.mxu1 %v1279_v17  ;;  %3431 = vmatpush3.bf16.xpose.msra.mxu0 %v1546_v16  ;;  %v1589_v28 = vsel %vm1090_vm3, %v1037_v19, 0 }
 0x5e3   : > { %3396 = vmatprep.mubr.msk.bf16.mxu1 %vm4197_vm2, %v4196_v40  ;;  %3400 = vmatprep.subr.bf16.mxu1 %v4196_v40 }
 0x5e4   : > { %3442 = vmatprep.subr.bf16.mxu0 %v4196_v40  ;;  %v1040_v29 = vpop.permute.xlu1 %1039 }
 0x5e5   : > { %v1042_v22 = vpop.permute.xlu0 %1041  ;;  %v1675_v30 = vsel %vm1090_vm3, %v1040_v29, 0 }
 0x5e6   : > { %v1718_v24 = vsel %vm1090_vm3, %v1042_v22, 0 }
 0x5e8   : > { %v1044_v36 = vpop.permute.xlu1 %1043 }
 0x5e9   : > { %3397 = vmatmul.mubr.msk.bf16.vlgmr.msra.gmra.mrb[20].mxu1 %vm1090_vm3, %v4793_v62  ;;  %3433 = vmatmul.mubr.msk.bf16.vlgmr.msra.gmra.mrb[12].mxu0 %vm1090_vm3, %v1020_v4  ;;  %v1761_v37 = vsel %vm1090_vm3, %v1044_v36, 0 }
 0x5ea   : > { %3401 = vmatpush3.bf16.xpose.msra.mxu1 %v1325_v20  ;;  %3443 = vmatpush3.bf16.xpose.msra.mxu0 %v1632_v21 }
 0x5eb   : > { %3402 = vmatprep.mubr.msk.bf16.mxu1 %vm4197_vm2, %v4196_v40  ;;  %3444 = vmatprep.mubr.msk.bf16.mxu0 %vm4197_vm2, %v4196_v40 }
 0x5ec   : > { %3406 = vmatprep.subr.bf16.mxu1 %v4196_v40  ;;  %3454 = vmatprep.subr.bf16.mxu0 %v4196_v40 }
 0x5f1   : > { %3403 = vmatmul.mubr.msk.bf16.vlgmr.msra.gmra.mrb[24].mxu1 %vm1090_vm3, %v4821_v9  ;;  %3445 = vmatmul.mubr.msk.bf16.vlgmr.msra.gmra.mrb[16].mxu0 %vm1090_vm3, %v4793_v62 }
 0x5f2   : > { %3407 = vmatpush3.bf16.xpose.msra.mxu1 %v1371_v23  ;;  %3455 = vmatpush3.bf16.xpose.msra.mxu0 %v1718_v24 }
 0x5f3   : > { %3408 = vmatprep.mubr.msk.bf16.mxu1 %vm4197_vm2, %v4196_v40  ;;  %3456 = vmatprep.mubr.msk.bf16.mxu0 %vm4197_vm2, %v4196_v40 }
 0x5f4   : > { %3412 = vmatprep.subr.bf16.mxu1 %v4196_v40  ;;  %3466 = vmatprep.subr.bf16.mxu0 %v4196_v40 }
 0x5f9   : > { %3409 = vmatmul.mubr.msk.bf16.vlgmr.msra.gmra.mrb[28].mxu1 %vm1090_vm3, %v1027_v11  ;;  %3457 = vmatmul.mubr.msk.bf16.vlgmr.msra.gmra.mrb[20].mxu0 %vm1090_vm3, %v1027_v11 }
 0x5fa   : > { %3413 = vmatpush3.bf16.xpose.msra.mxu1 %v1417_v25  ;;  %3467 = vmatpush3.bf16.msra.mxu0 %v2009_v26 }
 0x5fb   : > { %3414 = vmatprep.mubr.msk.bf16.mxu1 %vm4197_vm2, %v4196_v40  ;;  %3424 = vmatprep.subr.bf16.mxu1 %v4196_v40 }
 0x5fc   : > { %3468 = vmatprep.mubr.msk.bf16.mxu0 %vm4197_vm2, %v4196_v40  ;;  %3478 = vmatprep.subr.bf16.mxu0 %v4196_v40 }
 0x601   : > { %3415 = vmatmul.mubr.msk.bf16.vlgmr.msra.gmra.mrb[32].mxu1 %vm1090_vm3, %v4828_v14 }
 0x602   : > { %3425 = vmatpush3.bf16.xpose.msra.mxu1 %v1503_v27  ;;  %3426 = vmatprep.mubr.msk.bf16.mxu1 %vm4197_vm2, %v4196_v40 }
 0x603   : > { %3436 = vmatprep.subr.bf16.mxu1 %v4196_v40 }
 0x609   : > { %3427 = vmatmul.mubr.msk.bf16.vlgmr.msra.gmra.mrb[36].mxu1 %vm1090_vm3, %v4809_v0 }
 0x60a   : > { %3437 = vmatpush3.bf16.xpose.msra.mxu1 %v1589_v28  ;;  %3438 = vmatprep.mubr.msk.bf16.mxu1 %vm4197_vm2, %v4196_v40 }
 0x60b   : > { %3448 = vmatprep.subr.bf16.mxu1 %v4196_v40 }
 0x611   : > { %3439 = vmatmul.mubr.msk.bf16.vlgmr.msra.gmra.mrb[40].mxu1 %vm1090_vm3, %v4813_v6  ;;  %v4887_v31 = vpop.f32.mrb[8].mxu0 }
 0x612   : > { %3449 = vmatpush3.bf16.xpose.msra.mxu1 %v1675_v30  ;;  %v3422_v32 = vpop.f32.mrb[9].mxu0  ;;  %v1828_v33 = vsel %vm1803_vm5, %v4887_v31, -inf  ;;  %3450 = vmatprep.mubr.msk.bf16.mxu1 %vm4197_vm2, %v4196_v40 }
 0x613   : > { %1829 = vmax.xlane.f32.xlu1 %v1828_v33  ;;  %v1499_v34 = vpop.f32.mrb[10].mxu0  ;;  %3460 = vmatprep.subr.bf16.mxu1 %v4196_v40 }
 0x614   : > { %v3423_v35 = vpop.f32.mrb[11].mxu0 }
 0x619   : > { %3451 = vmatmul.mubr.msk.bf16.vlgmr.msra.gmra.mrb[44].mxu1 %vm1090_vm3, %v4821_v9 }
 0x61a   : > { %3461 = vmatpush3.bf16.xpose.msra.mxu1 %v1761_v37  ;;  %3462 = vmatprep.mubr.msk.bf16.mxu1 %vm4197_vm2, %v4196_v40 }
 0x61b   : > { %3472 = vmatprep.subr.bf16.mxu1 %v4196_v40 }
 0x621   : > { %3463 = vmatmul.mubr.msk.bf16.vlgmr.msra.gmra.mrb[48].mxu1 %vm1090_vm3, %v4828_v14 }
 0x622   : > { %3474 = vmatprep.mubr.msk.bf16.mxu1 %vm4197_vm2, %v4196_v40 }
 0x631   : > { %v4904_v38 = vpop.f32.mrb[4].mxu1 }
 0x632   : > { %v3374_v39 = vpop.f32.mrb[5].mxu1  ;;  %v1804_v41 = vsel %vm1803_vm5, %v4904_v38, -inf }
 0x633   : > { %v1134_v42 = vpop.f32.mrb[6].mxu1  ;;  %1805 = vmax.xlane.f32.xlu0 %v1804_v41 }
 0x634   : > { %v3375_v43 = vpop.f32.mrb[7].mxu1 }
 0x6a0   : > { %v1830_v13 = vpop.xlane.xlu1 %1829 }
 0x6a4   : > { %v4908_v44 = vpop.f32.mrb[8].mxu1 }
 0x6a5   : > { %v3380_v45 = vpop.f32.mrb[9].mxu1  ;;  %v1807_v46 = vsel %vm1803_vm5, %v4908_v44, -inf }
 0x6a6   : > { %v1180_v47 = vpop.f32.mrb[10].mxu1  ;;  %1808 = vmax.xlane.f32.xlu0 %v1807_v46 }
 0x6a7   : > { %v3381_v48 = vpop.f32.mrb[11].mxu1 }
 0x6ac   : > { %v4912_v49 = vpop.f32.mrb[12].mxu1 }
 0x6ad   : > { %v3386_v50 = vpop.f32.mrb[13].mxu1  ;;  %v1810_v37 = vsel %vm1803_vm5, %v4912_v49, -inf }
 0x6ae   : > { %v1226_v51 = vpop.f32.mrb[14].mxu1 }
 0x6af   : > { %v3387_v53 = vpop.f32.mrb[15].mxu1 }
 0x6b4   : > { %v4914_v54 = vpop.f32.mrb[16].mxu1 }
 0x6b5   : > { %v3392_v55 = vpop.f32.mrb[17].mxu1  ;;  %v1813_v42 = vsel %vm1803_vm5, %v4914_v54, -inf }
 0x6b6   : > { %v1272_v56 = vpop.f32.mrb[18].mxu1 }
 0x6b7   : > { %v3393_v57 = vpop.f32.mrb[19].mxu1 }
 0x6bc   : > { %v4916_v58 = vpop.f32.mrb[20].mxu1  ;;  %v4918_v60 = vpop.f32.mrb[12].mxu0 }
 0x6bd   : > { %v3398_v61 = vpop.f32.mrb[21].mxu1  ;;  %v3434_v62 = vpop.f32.mrb[13].mxu0  ;;  %v1834_v63 = vsel %vm1803_vm5, %v4918_v60, -inf  ;;  %v1816_v50 = vsel %vm1803_vm5, %v4916_v58, -inf }
 0x6be   : > { %v1318_v0 = vpop.f32.mrb[22].mxu1  ;;  %1835 = vmax.xlane.f32.xlu1 %v1834_v63  ;;  %v1585_v1 = vpop.f32.mrb[14].mxu0 }
 0x6bf   : > { %v3399_v2 = vpop.f32.mrb[23].mxu1  ;;  %v3435_v3 = vpop.f32.mrb[15].mxu0 }
 0x6c0   : > { %v1806_v14 = vpop.xlane.xlu0 %1805 }
 0x6c1   : > { %v1852_v24 = vmax.f32 %v1806_v14, %v1830_v13 }
 0x6c3   : > { %v1884_v25 = vsub.f32 %v4887_v31, %v1852_v24  ;;  %v1860_v31 = vsub.f32 %v4904_v38, %v1852_v24 }
 0x6c4   : > { %v4922_v4 = vpop.f32.mrb[24].mxu1  ;;  %v4924_v5 = vpop.f32.mrb[16].mxu0 }
 0x6c5   : > { %v3404_v6 = vpop.f32.mrb[25].mxu1  ;;  %v3446_v7 = vpop.f32.mrb[17].mxu0  ;;  %v1840_v9 = vsel %vm1803_vm5, %v4924_v5, -inf  ;;  %v1892_v30 = vmul.f32 1.442695, %v1884_v25  ;;  %v1819_v55 = vsel %vm1803_vm5, %v4922_v4, -inf }
 0x6c6   : > { %v1364_v8 = vpop.f32.mrb[26].mxu1  ;;  %v1671_v10 = vpop.f32.mrb[18].mxu0  ;;  %1841 = vmax.xlane.f32.xlu1 %v1840_v9  ;;  %v1868_v48 = vmul.f32 1.442695, %v1860_v31 }
 0x6c7   : > { %v3405_v11 = vpop.f32.mrb[27].mxu1  ;;  %v3447_v12 = vpop.f32.mrb[19].mxu0  ;;  %3818 = vpow2.f32 %v1892_v30 }
 0x6c8   : > { %3820 = vpow2.f32 %v1868_v48 }
 0x6cc   : > { %v4928_v15 = vpop.f32.mrb[28].mxu1  ;;  %v4930_v16 = vpop.f32.mrb[20].mxu0 }
 0x6cd   : > { %v3410_v17 = vpop.f32.mrb[29].mxu1  ;;  %v3458_v18 = vpop.f32.mrb[21].mxu0  ;;  %v1846_v19 = vsel %vm1803_vm5, %v4930_v16, -inf  ;;  %v1822_v62 = vsel %vm1803_vm5, %v4928_v15, -inf }
 0x6ce   : > { %v1410_v20 = vpop.f32.mrb[30].mxu1  ;;  %1847 = vmax.xlane.f32.xlu1 %v1846_v19  ;;  %v1757_v21 = vpop.f32.mrb[22].mxu0 }
 0x6cf   : > { %v3411_v22 = vpop.f32.mrb[31].mxu1  ;;  %v3459_v23 = vpop.f32.mrb[23].mxu0 }
 0x6d1   : > { %v4950_v45 = vpop.eup %3818 }
 0x6d2   : > { %v1932_v38 = vsel %vm1803_vm5, %v4950_v45, 0.0  ;;  %v4970_v3 = vpop.eup %3820 }
 0x6d3   : > { %v1908_v8 = vsel %vm1803_vm5, %v4970_v3, 0.0 }
 0x6d4   : > { %v4935_v26 = vpop.f32.mrb[32].mxu1 }
 0x6d5   : > { %v3416_v27 = vpop.f32.mrb[33].mxu1  ;;  %v1825_v1 = vsel %vm1803_vm5, %v4935_v26, -inf }
 0x6d6   : > { %v1456_v28 = vpop.f32.mrb[34].mxu1 }
 0x6d7   : > { %v3417_v29 = vpop.f32.mrb[35].mxu1 }
 0x6dc   : > { %v4937_v32 = vpop.f32.mrb[36].mxu1 }
 0x6dd   : > { %v3428_v33 = vpop.f32.mrb[37].mxu1  ;;  %v1831_v34 = vsel %vm1803_vm5, %v4937_v32, -inf }
 0x6de   : > { %1832 = vmax.xlane.f32.xlu0 %v1831_v34  ;;  %v1542_v35 = vpop.f32.mrb[38].mxu1 }
 0x6df   : > { %v3429_v36 = vpop.f32.mrb[39].mxu1 }
 0x6e2   : > { %1811 = vmax.xlane.f32.xlu0 %v1810_v37 }
 0x6e4   : > { %v4944_v39 = vpop.f32.mrb[40].mxu1 }
 0x6e5   : > { %v3440_v41 = vpop.f32.mrb[41].mxu1  ;;  %v1837_v43 = vsel %vm1803_vm5, %v4944_v39, -inf }
 0x6e6   : > { %1814 = vmax.xlane.f32.xlu0 %v1813_v42  ;;  %v1628_v46 = vpop.f32.mrb[42].mxu1  ;;  %1838 = vmax.xlane.f32.xlu1 %v1837_v43 }
 0x6e7   : > { %v3441_v47 = vpop.f32.mrb[43].mxu1 }
 0x6ea   : > { %1817 = vmax.xlane.f32.xlu0 %v1816_v50  ;;  %1933 = vadd.xlane.f32.xlu1 %v1932_v38 }
 0x6ec   : > { %v4956_v51 = vpop.f32.mrb[44].mxu1 }
 0x6ed   : > { %v3452_v53 = vpop.f32.mrb[45].mxu1  ;;  %v1843_v56 = vsel %vm1803_vm5, %v4956_v51, -inf }
 0x6ee   : > { %1820 = vmax.xlane.f32.xlu0 %v1819_v55  ;;  %v1714_v57 = vpop.f32.mrb[46].mxu1  ;;  %1844 = vmax.xlane.f32.xlu1 %v1843_v56 }
 0x6ef   : > { %v3453_v61 = vpop.f32.mrb[47].mxu1 }
 0x6f2   : > { %1823 = vmax.xlane.f32.xlu0 %v1822_v62 }
 0x6f4   : > { %v4964_v63 = vpop.f32.mrb[48].mxu1 }
 0x6f5   : > { %v3464_v0 = vpop.f32.mrb[49].mxu1  ;;  %v1849_v2 = vsel %vm1803_vm5, %v4964_v63, -inf }
 0x6f6   : > { %1826 = vmax.xlane.f32.xlu0 %v1825_v1  ;;  %v1800_v6 = vpop.f32.mrb[50].mxu1  ;;  %1850 = vmax.xlane.f32.xlu1 %v1849_v2 }
 0x6f7   : > { %v3465_v7 = vpop.f32.mrb[51].mxu1 }
 0x6fa   : > { %1909 = vadd.xlane.f32.xlu0 %v1908_v8 }
 0x733   : > { %v1809_v9 = vpop.xlane.xlu0 %1808 }
 0x74b   : > { %v1836_v10 = vpop.xlane.xlu1 %1835 }
 0x753   : > { %v1842_v11 = vpop.xlane.xlu1 %1841 }
 0x75b   : > { %v1848_v13 = vpop.xlane.xlu1 %1847 }
 0x76b   : > { %v1833_v12 = vpop.xlane.xlu0 %1832 }
 0x76c   : > { %v1853_v34 = vmax.f32 %v1809_v9, %v1833_v12 }
 0x76e   : > { %v1885_v46 = vsub.f32 %v4937_v32, %v1853_v34 }
 0x76f   : > { %v1812_v14 = vpop.xlane.xlu0 %1811 }
 0x770   : > { %v1854_v17 = vmax.f32 %v1812_v14, %v1836_v10  ;;  %v1894_v32 = vmul.f32 1.442695, %v1885_v46 }
 0x772   : > { %v1862_v18 = vsub.f32 %v4912_v49, %v1854_v17  ;;  %v1886_v19 = vsub.f32 %v4918_v60, %v1854_v17 }
 0x773   : > { %v1815_v20 = vpop.xlane.xlu0 %1814  ;;  %v1839_v21 = vpop.xlane.xlu1 %1838 }
 0x774   : > { %v1872_v22 = vmul.f32 1.442695, %v1862_v18  ;;  %v1896_v23 = vmul.f32 1.442695, %v1886_v19  ;;  %v4984_v31 = vmax.f32 %v1815_v20, %v1839_v21  ;;  %v5040_v20 = vrot.slane %v4772_v52, 4 }
 0x776   : > { %3822 = vpow2.f32 %v1872_v22  ;;  %v1863_v53 = vsub.f32 %v4914_v54, %v4984_v31 }
 0x777   : > { %3824 = vpow2.f32 %v1896_v23  ;;  %v1818_v24 = vpop.xlane.xlu0 %1817  ;;  %v1934_v25 = vpop.xlane.xlu1 %1933 }
 0x778   : > { %v1856_v27 = vmax.f32 %v1818_v24, %v1842_v11  ;;  %v1874_v61 = vmul.f32 1.442695, %v1863_v53  ;;  %v1887_v24 = vsub.f32 %v4944_v39, %v4984_v31 }
 0x77a   : > { %v1864_v28 = vsub.f32 %v4916_v58, %v1856_v27  ;;  %v1888_v29 = vsub.f32 %v4924_v5, %v1856_v27  ;;  %v1861_v5 = vsub.f32 %v4908_v44, %v1853_v34  ;;  %v1898_v27 = vmul.f32 1.442695, %v1887_v24 }
 0x77b   : > { %v1821_v30 = vpop.xlane.xlu0 %1820  ;;  %v1845_v33 = vpop.xlane.xlu1 %1844 }
 0x77c   : > { %v1876_v35 = vmul.f32 1.442695, %v1864_v28  ;;  %v1900_v49 = vmul.f32 1.442695, %v1888_v29  ;;  %v4978_v36 = vmax.f32 %v1821_v30, %v1845_v33  ;;  %v1870_v55 = vmul.f32 1.442695, %v1861_v5 }
 0x77e   : > { %3826 = vpow2.f32 %v1876_v35  ;;  %v1865_v60 = vsub.f32 %v4922_v4, %v4978_v36  ;;  %v1889_v37 = vsub.f32 %v4956_v51, %v4978_v36  ;;  %v5087_v36 = vrot.slane %v4780_v59, 4 }
 0x77f   : > { %3828 = vpow2.f32 %v1900_v49  ;;  %v1824_v58 = vpop.xlane.xlu0 %1823 }
 0x780   : > { %v4986_v41 = vpop.eup %3822  ;;  %v1858_v42 = vmax.f32 %v1824_v58, %v1848_v13  ;;  %v1878_v22 = vmul.f32 1.442695, %v1865_v60 }
 0x781   : > { %v4989_v43 = vpop.eup %3824  ;;  %v1914_v47 = vsel %vm1803_vm5, %v4986_v41, 0.0 }
 0x782   : > { %v1866_v48 = vsub.f32 %v4928_v15, %v1858_v42  ;;  %v1890_v50 = vsub.f32 %v4930_v16, %v1858_v42  ;;  %1915 = vadd.xlane.f32.xlu0 %v1914_v47  ;;  %v1938_v38 = vsel %vm1803_vm5, %v4989_v43, 0.0 }
 0x783   : > { %1939 = vadd.xlane.f32.xlu1 %v1938_v38  ;;  %v1827_v44 = vpop.xlane.xlu0 %1826 }
 0x784   : > { %v1880_v56 = vmul.f32 1.442695, %v1866_v48  ;;  %v1904_v57 = vmul.f32 1.442695, %v1890_v50 }
 0x786   : > { %3830 = vpow2.f32 %v1880_v56 }
 0x787   : > { %3832 = vpow2.f32 %v1904_v57  ;;  %v1910_v62 = vpop.xlane.xlu0 %1909 }
 0x788   : > { %v5000_v15 = vpop.eup %3826  ;;  %3834 = vpow2.f32 %v1870_v55  ;;  %v1956_v16 = vadd.f32 %v1934_v25, %v1910_v62 }
 0x789   : > { %v5002_v0 = vpop.eup %3828  ;;  %3836 = vpow2.f32 %v1894_v32  ;;  %v1920_v54 = vsel %vm1803_vm5, %v5000_v15, 0.0 }
 0x78a   : > { %1921 = vadd.xlane.f32.xlu0 %v1920_v54  ;;  %v1944_v1 = vsel %vm1803_vm5, %v5002_v0, 0.0  ;;  %3838 = vpow2.f32 %v1874_v61 }
 0x78b   : > { %1945 = vadd.xlane.f32.xlu1 %v1944_v1  ;;  %3840 = vrcp.f32 %v1956_v16 }
 0x78c   : > { %3842 = vpow2.f32 %v1878_v22 }
 0x790   : > { %v5008_v2 = vpop.eup %3830 }
 0x791   : > { %v5010_v6 = vpop.eup %3832  ;;  %v1926_v7 = vsel %vm1803_vm5, %v5008_v2, 0.0 }
 0x792   : > { %v5014_v8 = vpop.eup %3834  ;;  %v1950_v9 = vsel %vm1803_vm5, %v5010_v6, 0.0  ;;  %1927 = vadd.xlane.f32.xlu0 %v1926_v7 }
 0x793   : > { %v5018_v10 = vpop.eup %3836  ;;  %1951 = vadd.xlane.f32.xlu1 %v1950_v9  ;;  %v1911_v12 = vsel %vm1803_vm5, %v5014_v8, 0.0 }
 0x794   : > { %v5020_v11 = vpop.eup %3838  ;;  %v1935_v14 = vsel %vm1803_vm5, %v5018_v10, 0.0 }
 0x795   : > { %v5024_v13 = vpop.eup %3840  ;;  %v1917_v19 = vsel %vm1803_vm5, %v5020_v11, 0.0 }
 0x796   : > { %1912 = vadd.xlane.f32.xlu0 %v1911_v12  ;;  %v1988_v17 = vmul.f32 %v5024_v13, %v4950_v45  ;;  %v1851_v45 = vpop.xlane.xlu1 %1850  ;;  %v5056_v4 = vpop.eup %3842 }
 0x797   : > { %1936 = vadd.xlane.f32.xlu1 %v1935_v14  ;;  %v1859_v21 = vmax.f32 %v1827_v44, %v1851_v45 }
 0x798   : > { %v1996_v18 = vpack.c.bf16 %v1988_v17, %v1988_v17 }
 0x799   : > { %v1867_v23 = vsub.f32 %v4935_v26, %v1859_v21  ;;  %v1891_v28 = vsub.f32 %v4964_v63, %v1859_v21  ;;  %v1923_v26 = vsel %vm1803_vm5, %v5056_v4, 0.0 }
 0x79a   : > { %1918 = vadd.xlane.f32.xlu0 %v1917_v19  ;;  %3469 = vmatmul.mubr.msk.bf16.vlgmr.msra.gmra.mrb[24].mxu0 %vm1803_vm5, %v1996_v18 }
 0x79b   : > { %3480 = vmatprep.mubr.msk.bf16.mxu0 %vm4197_vm2, %v4196_v40  ;;  %v1882_v25 = vmul.f32 1.442695, %v1867_v23  ;;  %v1906_v29 = vmul.f32 1.442695, %v1891_v28 }
 0x79d   : > { %3844 = vpow2.f32 %v1882_v25 }
 0x79e   : > { %3846 = vpow2.f32 %v1898_v27 }
 0x7a7   : > { %v5060_v39 = vpop.eup %3844 }
 0x7a8   : > { %1049 = vrot.lane.b32.xlu1 %v4772_v52, %s4200_s9  ;;  %v5062_v30 = vpop.eup %3846  ;;  %v1929_v33 = vsel %vm1803_vm5, %v5060_v39, 0.0 }
 0x7a9   : > { %v1941_v51 = vsel %vm1803_vm5, %v5062_v30, 0.0 }
 0x7ac   : > { %1051 = vrot.lane.b32.xlu1 %v4772_v52, %s4201_s2 }
 0x7b0   : > { %1054 = vrot.lane.b32.xlu1 %v5040_v20, %s4199_s13  ;;  %1047 = vrot.lane.b32.xlu0 %v4772_v52, %s4199_s13  ;;  %v1902_v52 = vmul.f32 1.442695, %v1889_v37 }
 0x7b2   : > { %3848 = vpow2.f32 %v1902_v52 }
 0x7b3   : > { %3850 = vpow2.f32 %v1906_v29  ;;  %v2377_v29 = vsel %vm2007_vm4, %v4780_v59, 0 }
 0x7bc   : > { %v5068_v63 = vpop.eup %3848 }
 0x7bd   : > { %v1947_v34 = vsel %vm1803_vm5, %v5068_v63, 0.0  ;;  %v5072_v35 = vpop.eup %3850 }
 0x7be   : > { %v1953_v49 = vsel %vm1803_vm5, %v5072_v35, 0.0 }
 0x7cf   : > { %1924 = vadd.xlane.f32.xlu0 %v1923_v26 }
 0x7d3   : > { %1930 = vadd.xlane.f32.xlu0 %v1929_v33 }
 0x7d4   : > { %1942 = vadd.xlane.f32.xlu1 %v1941_v51 }
 0x7d8   : > { %1948 = vadd.xlane.f32.xlu1 %v1947_v34 }
 0x7dc   : > { %1954 = vadd.xlane.f32.xlu1 %v1953_v49 }
 0x7e9   : > { %1056 = vrot.lane.b32.xlu0 %v5040_v20, %s4200_s9 }
 0x7ed   : > { %1058 = vrot.lane.b32.xlu1 %v5040_v20, %s4201_s2  ;;  %1077 = vrot.lane.b32.xlu0 %v4780_v59, %s4199_s13 }
 0x7f1   : > { %1079 = vrot.lane.b32.xlu1 %v4780_v59, %s4200_s9  ;;  %1081 = vrot.lane.b32.xlu0 %v4780_v59, %s4201_s2 }
 0x7f5   : > { %1084 = vrot.lane.b32.xlu1 %v5087_v36, %s4199_s13  ;;  %1086 = vrot.lane.b32.xlu0 %v5087_v36, %s4200_s9 }
 0x7f9   : > { %1088 = vrot.lane.b32.xlu1 %v5087_v36, %s4201_s2 }
 0x80f   : > { %v1916_v60 = vpop.xlane.xlu0 %1915 }
 0x810   : > { %v1940_v37 = vpop.xlane.xlu1 %1939 }
 0x811   : > { %v1958_v31 = vadd.f32 %v1940_v37, %v1916_v60 }
 0x813   : > { %3852 = vrcp.f32 %v1958_v31 }
 0x817   : > { %v1922_v58 = vpop.xlane.xlu0 %1921 }
 0x818   : > { %v1946_v5 = vpop.xlane.xlu1 %1945 }
 0x819   : > { %v1960_v42 = vadd.f32 %v1946_v5, %v1922_v58 }
 0x81b   : > { %3854 = vrcp.f32 %v1960_v42 }
 0x81d   : > { %v5095_v50 = vpop.eup %3852 }
 0x81e   : > { %v1990_v44 = vmul.f32 %v5095_v50, %v4989_v43  ;;  %v2193_v43 = vsel %vm2007_vm4, %v5040_v20, 0 }
 0x81f   : > { %v1928_v46 = vpop.xlane.xlu0 %1927 }
 0x820   : > { %v1952_v47 = vpop.xlane.xlu1 %1951  ;;  %v1998_v61 = vpack.c.bf16 %v1990_v44, %v1990_v44 }
 0x823   : > { %v1913_v48 = vpop.xlane.xlu0 %1912 }
 0x824   : > { %v1937_v38 = vpop.xlane.xlu1 %1936 }
 0x825   : > { %v1957_v53 = vadd.f32 %v1937_v38, %v1913_v48  ;;  %v5101_v62 = vpop.eup %3854 }
 0x826   : > { %v1992_v54 = vmul.f32 %v5101_v62, %v5002_v0  ;;  %v1962_v0 = vadd.f32 %v1952_v47, %v1928_v46 }
 0x827   : > { %3856 = vrcp.f32 %v1957_v53  ;;  %v1919_v55 = vpop.xlane.xlu0 %1918 }
 0x828   : > { %v1050_v56 = vpop.permute.xlu1 %1049  ;;  %v2000_v12 = vpack.c.bf16 %v1992_v54, %v1992_v54  ;;  %3858 = vrcp.f32 %v1962_v0 }
 0x829   : > { %v2101_v57 = vsel %vm2007_vm4, %v1050_v56, 0 }
 0x82a   : > { %3479 = vmatpush3.bf16.msra.mxu0 %v2101_v57 }
 0x82b   : > { %v1048_v32 = vpop.permute.xlu0 %1047  ;;  %3490 = vmatprep.subr.bf16.mxu0 %v4196_v40 }
 0x82c   : > { %v2055_v16 = vsel %vm2007_vm4, %v1048_v32, 0  ;;  %v1052_v9 = vpop.permute.xlu1 %1051 }
 0x82d   : > { %3481 = vmatmul.mubr.msk.bf16.vlgmr.msra.gmra.mrb[28].mxu0 %vm1803_vm5, %v1998_v61  ;;  %3473 = vmatpush3.bf16.msra.mxu1 %v2055_v16  ;;  %v2147_v17 = vsel %vm2007_vm4, %v1052_v9, 0 }
 0x82e   : > { %3491 = vmatpush3.bf16.msra.mxu0 %v2193_v43  ;;  %3492 = vmatprep.mubr.msk.bf16.mxu0 %vm4197_vm2, %v4196_v40 }
 0x82f   : > { %3484 = vmatprep.subr.bf16.mxu1 %v4196_v40  ;;  %3502 = vmatprep.subr.bf16.mxu0 %v4196_v40 }
 0x830   : > { %v1055_v18 = vpop.permute.xlu1 %1054 }
 0x831   : > { %v5113_v1 = vpop.eup %3856 }
 0x832   : > { %v1989_v7 = vmul.f32 %v5113_v1, %v5018_v10  ;;  %v5125_v19 = vpop.eup %3858 }
 0x833   : > { %v1994_v22 = vmul.f32 %v5125_v19, %v5010_v6  ;;  %v1972_v6 = vmul.f32 %v5024_v13, %v4970_v3  ;;  %v1974_v3 = vmul.f32 %v5095_v50, %v4986_v41  ;;  %v2239_v13 = vsel %vm2007_vm4, %v1055_v18, 0 }
 0x834   : > { %v1997_v14 = vpack.c.bf16 %v1989_v7, %v1989_v7  ;;  %v2561_v41 = vsel %vm2007_vm4, %v5087_v36, 0  ;;  %v1978_v44 = vmul.f32 %v5125_v19, %v5008_v2  ;;  %v3806_v19 = vld [vmem:[%s4644_s4] sm:$0xff]  }
 0x835   : > { %3493 = vmatmul.mubr.msk.bf16.vlgmr.msra.gmra.mrb[32].mxu0 %vm1803_vm5, %v2000_v12  ;;  %v2002_v52 = vpack.c.bf16 %v1994_v22, %v1994_v22  ;;  %v1980_v49 = vpack.c.bf16 %v1972_v6, %v1972_v6  ;;  %v1982_v5 = vpack.c.bf16 %v1974_v3, %v1974_v3 }
 0x836   : > { %3475 = vmatmul.mubr.msk.bf16.vlgmr.msra.gmra.mrb[52].mxu1 %vm1803_vm5, %v1997_v14  ;;  %3504 = vmatprep.mubr.msk.bf16.mxu0 %vm4197_vm2, %v4196_v40  ;;  %v1986_v56 = vpack.c.bf16 %v1978_v44, %v1978_v44 }
 0x837   : > { %3485 = vmatpush3.bf16.msra.mxu1 %v2147_v17  ;;  %3486 = vmatprep.mubr.msk.bf16.mxu1 %vm4197_vm2, %v4196_v40 }
 0x838   : > { %3496 = vmatprep.subr.bf16.mxu1 %v4196_v40 }
 0x85c   : > { %v1925_v10 = vpop.xlane.xlu0 %1924 }
 0x860   : > { %v1931_v20 = vpop.xlane.xlu0 %1930 }
 0x861   : > { %v1943_v45 = vpop.xlane.xlu1 %1942 }
 0x862   : > { %v1959_v21 = vadd.f32 %v1943_v45, %v1919_v55  ;;  %v3807_v45 = vld [vmem:[%s4644_s4 + $0x8] sm:$0xff]  }
 0x864   : > { %3860 = vrcp.f32 %v1959_v21  ;;  %v1057_v23 = vpop.permute.xlu0 %1056 }
 0x865   : > { %v2285_v24 = vsel %vm2007_vm4, %v1057_v23, 0  ;;  %v1949_v25 = vpop.xlane.xlu1 %1948  ;;  %v3808_v23 = vld [vmem:[%s4644_s4 + $0x10] sm:$0xff]  }
 0x866   : > { %v1961_v27 = vadd.f32 %v1949_v25, %v1925_v10  ;;  %3503 = vmatpush3.bf16.msra.mxu0 %v2285_v24  ;;  %v3809_v25 = vld [vmem:[%s4644_s4 + $0x18] sm:$0xff]  }
 0x867   : > { %3514 = vmatprep.subr.bf16.mxu0 %v4196_v40 }
 0x868   : > { %3862 = vrcp.f32 %v1961_v27  ;;  %v1078_v31 = vpop.permute.xlu0 %1077 }
 0x869   : > { %v1955_v28 = vpop.xlane.xlu1 %1954  ;;  %3505 = vmatmul.mubr.msk.bf16.vlgmr.msra.gmra.mrb[36].mxu0 %vm1803_vm5, %v2002_v52  ;;  %v2423_v55 = vsel %vm2007_vm4, %v1078_v31, 0 }
 0x86a   : > { %3515 = vmatpush3.bf16.msra.mxu0 %v2377_v29  ;;  %3516 = vmatprep.mubr.msk.bf16.mxu0 %vm4197_vm2, %v4196_v40  ;;  %v1963_v26 = vadd.f32 %v1955_v28, %v1931_v20 }
 0x86b   : > { %3526 = vmatprep.subr.bf16.mxu0 %v4196_v40 }
 0x86c   : > { %3864 = vrcp.f32 %v1963_v26  ;;  %v1082_v42 = vpop.permute.xlu0 %1081 }
 0x86d   : > { %v1059_v33 = vpop.permute.xlu1 %1058  ;;  %v2515_v2 = vsel %vm2007_vm4, %v1082_v42, 0 }
 0x86e   : > { %v3861_v51 = vpop.eup %3860  ;;  %v2331_v48 = vsel %vm2007_vm4, %v1059_v33, 0 }
 0x86f   : > { %v1991_v34 = vmul.f32 %v3861_v51, %v5062_v30  ;;  %v1975_v32 = vmul.f32 %v3861_v51, %v5020_v11 }
 0x870   : > { %v1087_v50 = vpop.permute.xlu0 %1086 }
 0x871   : > { %v1080_v60 = vpop.permute.xlu1 %1079  ;;  %3517 = vmatmul.mubr.msk.bf16.vlgmr.msra.gmra.mrb[24].mxu0 %vm1803_vm5, %v1980_v49  ;;  %v1999_v59 = vpack.c.bf16 %v1991_v34, %v1991_v34  ;;  %v2653_v53 = vsel %vm2007_vm4, %v1087_v50, 0  ;;  %v1983_v61 = vpack.c.bf16 %v1975_v32, %v1975_v32  ;;  %v3810_v49 = vld [vmem:[%s4644_s4 + $0x20] sm:$0xff]  }
 0x872   : > { %v3863_v37 = vpop.eup %3862  ;;  %v2469_v58 = vsel %vm2007_vm4, %v1080_v60, 0  ;;  %3528 = vmatprep.mubr.msk.bf16.mxu0 %vm4197_vm2, %v4196_v40 }
 0x873   : > { %3487 = vmatmul.mubr.msk.bf16.vlgmr.msra.gmra.mrb[56].mxu1 %vm1803_vm5, %v1999_v59  ;;  %3527 = vmatpush3.bf16.msra.mxu0 %v2469_v58  ;;  %v1993_v30 = vmul.f32 %v3863_v37, %v5068_v63  ;;  %v1976_v63 = vmul.f32 %v5101_v62, %v5000_v15  ;;  %v1977_v16 = vmul.f32 %v3863_v37, %v5056_v4  ;;  %v3811_v59 = vld [vmem:[%s4644_s4 + $0x28] sm:$0xff]   ;;  %v3812_v58 = vld [vmem:[%s4644_s4 + $0x30] sm:$0xff]  }
 0x874   : > { %3497 = vmatpush3.bf16.msra.mxu1 %v2239_v13  ;;  %3538 = vmatprep.subr.bf16.mxu0 %v4196_v40  ;;  %v3813_v13 = vld [vmem:[%s4644_s4 + $0x38] sm:$0xff]  }
 0x875   : > { %3498 = vmatprep.mubr.msk.bf16.mxu1 %vm4197_vm2, %v4196_v40  ;;  %3508 = vmatprep.subr.bf16.mxu1 %v4196_v40  ;;  %v2001_v46 = vpack.c.bf16 %v1993_v30, %v1993_v30  ;;  %v1984_v38 = vpack.c.bf16 %v1976_v63, %v1976_v63  ;;  %v1985_v54 = vpack.c.bf16 %v1977_v16, %v1977_v16 }
 0x876   : > { %v3865_v47 = vpop.eup %3864 }
 0x877   : > { %v1995_v36 = vmul.f32 %v3865_v47, %v5072_v35  ;;  %v1973_v35 = vmul.f32 %v5113_v1, %v5014_v8  ;;  %v1085_v8 = vpop.permute.xlu1 %1084  ;;  %v1979_v1 = vmul.f32 %v3865_v47, %v5060_v39 }
 0x878   : > { %v2607_v62 = vsel %vm2007_vm4, %v1085_v8, 0 }
 0x879   : > { %3529 = vmatmul.mubr.msk.bf16.vlgmr.msra.gmra.mrb[28].mxu0 %vm1803_vm5, %v1982_v5  ;;  %v2003_v15 = vpack.c.bf16 %v1995_v36, %v1995_v36  ;;  %v1981_v57 = vpack.c.bf16 %v1973_v35, %v1973_v35  ;;  %v1987_v7 = vpack.c.bf16 %v1979_v1, %v1979_v1 }
 0x87a   : > { %3539 = vmatpush3.bf16.msra.mxu0 %v2561_v41  ;;  %3540 = vmatprep.mubr.msk.bf16.mxu0 %vm4197_vm2, %v4196_v40 }
 0x87b   : > { %3499 = vmatmul.mubr.msk.bf16.vlgmr.msra.gmra.mrb[60].mxu1 %vm1803_vm5, %v2001_v46  ;;  %3550 = vmatprep.subr.bf16.mxu0 %v4196_v40  ;;  %v1089_v43 = vpop.permute.xlu1 %1088 }
 0x87c   : > { %3509 = vmatpush3.bf16.msra.mxu1 %v2331_v48  ;;  %3510 = vmatprep.mubr.msk.bf16.mxu1 %vm4197_vm2, %v4196_v40  ;;  %v2699_v11 = vsel %vm2007_vm4, %v1089_v43, 0 }
 0x87d   : > { %3520 = vmatprep.subr.bf16.mxu1 %v4196_v40 }
 0x881   : > { %3541 = vmatmul.mubr.msk.bf16.vlgmr.msra.gmra.mrb[32].mxu0 %vm1803_vm5, %v1984_v38 }
 0x882   : > { %3551 = vmatpush3.bf16.msra.mxu0 %v2653_v53  ;;  %3552 = vmatprep.mubr.msk.bf16.mxu0 %vm4197_vm2, %v4196_v40 }
 0x883   : > { %3511 = vmatmul.mubr.msk.bf16.vlgmr.msra.gmra.mrb[64].mxu1 %vm1803_vm5, %v2003_v15  ;;  %3562 = vmatprep.subr.bf16.mxu0 %v4196_v40 }
 0x884   : > { %3521 = vmatpush3.bf16.msra.mxu1 %v2423_v55  ;;  %3522 = vmatprep.mubr.msk.bf16.mxu1 %vm4197_vm2, %v4196_v40 }
 0x885   : > { %3532 = vmatprep.subr.bf16.mxu1 %v4196_v40 }
 0x889   : > { %3553 = vmatmul.mubr.msk.bf16.vlgmr.msra.gmra.mrb[36].mxu0 %vm1803_vm5, %v1986_v56 }
 0x88a   : > { %3578 = vmatprep.mubr.msk.bf16.mxu0 %vm4197_vm2, %v4196_v40  ;;  %3563 = vmatpush3.bf16.msra.mxu0 %v3806_v19 }
 0x88b   : > { %3523 = vmatmul.mubr.msk.bf16.vlgmr.msra.gmra.mrb[52].mxu1 %vm1803_vm5, %v1981_v57  ;;  %3564 = vmatprep.subr.bf16.mxu0 %v4196_v40 }
 0x88c   : > { %3533 = vmatpush3.bf16.msra.mxu1 %v2515_v2  ;;  %3534 = vmatprep.mubr.msk.bf16.mxu1 %vm4197_vm2, %v4196_v40 }
 0x88d   : > { %3544 = vmatprep.subr.bf16.mxu1 %v4196_v40 }
 0x88e   : > { %3565 = vmatpush3.bf16.msra.mxu0 %v3807_v45 }
 0x88f   : > { %3566 = vmatprep.subr.bf16.mxu0 %v4196_v40 }
 0x892   : > { %3567 = vmatpush3.bf16.msra.mxu0 %v3808_v23 }
 0x893   : > { %3535 = vmatmul.mubr.msk.bf16.vlgmr.msra.gmra.mrb[56].mxu1 %vm1803_vm5, %v1983_v61  ;;  %3568 = vmatprep.subr.bf16.mxu0 %v4196_v40 }
 0x894   : > { %3545 = vmatpush3.bf16.msra.mxu1 %v2607_v62  ;;  %3546 = vmatprep.mubr.msk.bf16.mxu1 %vm4197_vm2, %v4196_v40 }
 0x895   : > { %3556 = vmatprep.subr.bf16.mxu1 %v4196_v40 }
 0x896   : > { %3569 = vmatpush3.bf16.msra.mxu0 %v3809_v25 }
 0x897   : > { %3570 = vmatprep.subr.bf16.mxu0 %v4196_v40 }
 0x89a   : > { %3571 = vmatpush3.bf16.msra.mxu0 %v3810_v49 }
 0x89b   : > { %3547 = vmatmul.mubr.msk.bf16.vlgmr.msra.gmra.mrb[60].mxu1 %vm1803_vm5, %v1985_v54  ;;  %3572 = vmatprep.subr.bf16.mxu0 %v4196_v40 }
 0x89c   : > { %3557 = vmatpush3.bf16.msra.mxu1 %v2699_v11  ;;  %3558 = vmatprep.mubr.msk.bf16.mxu1 %vm4197_vm2, %v4196_v40 }
 0x89e   : > { %3573 = vmatpush3.bf16.msra.mxu0 %v3811_v59 }
 0x89f   : > { %3574 = vmatprep.subr.bf16.mxu0 %v4196_v40 }
 0x8a2   : > { %3575 = vmatpush3.bf16.msra.mxu0 %v3812_v58 }
 0x8a3   : > { %3559 = vmatmul.mubr.msk.bf16.vlgmr.msra.gmra.mrb[64].mxu1 %vm1803_vm5, %v1987_v7  ;;  %3576 = vmatprep.subr.bf16.mxu0 %v4196_v40  ;;  %v3866_v7 = vld [vmem:[#allocation3] sm:$0xff] }
 0x8a6   : > { %3577 = vmatpush3.bf16.msra.mxu0 %v3813_v13 }
 0x944   : > { %v5202_v4 = vpop.f32.mrb[24].mxu0 }
 0x945   : > { %v3518_v9 = vpop.f32.mrb[25].mxu0  ;;  %v2741_v2 = vpack.c.bf16 %v5202_v4, %v5202_v4 }
 0x946   : > { %v2416_v12 = vpop.f32.mrb[26].mxu0 }
 0x947   : > { %v3519_v14 = vpop.f32.mrb[27].mxu0 }
 0x94c   : > { %v2505_v17 = vpop.f32.mrb[28].mxu0 }
 0x94d   : > { %v3530_v0 = vpop.f32.mrb[29].mxu0  ;;  %v2743_v47 = vpack.c.bf16 %v2505_v17, %v2505_v17  ;;  %v3867_v17 = vld [vmem:[#allocation3 + $0x8] sm:$0xff] }
 0x94e   : > { %v2508_v10 = vpop.f32.mrb[30].mxu0 }
 0x94f   : > { %v3531_v18 = vpop.f32.mrb[31].mxu0 }
 0x954   : > { %v5205_v20 = vpop.f32.mrb[32].mxu0 }
 0x955   : > { %v3542_v39 = vpop.f32.mrb[33].mxu0  ;;  %v2745_v44 = vpack.c.bf16 %v5205_v20, %v5205_v20 }
 0x956   : > { %v2600_v21 = vpop.f32.mrb[34].mxu0 }
 0x957   : > { %v3543_v22 = vpop.f32.mrb[35].mxu0 }
 0x95c   : > { %v2689_v24 = vpop.f32.mrb[36].mxu0 }
 0x95d   : > { %v2747_v27 = vpack.c.bf16 %v2689_v24, %v2689_v24  ;;  %v3554_v52 = vpop.f32.mrb[37].mxu0 }
 0x95e   : > { %v2459_v28 = vpop.f32.mrb[52].mxu1  ;;  %v2692_v29 = vpop.f32.mrb[38].mxu0 }
 0x95f   : > { %v2742_v6 = vpack.c.bf16 %v2459_v28, %v2459_v28  ;;  %v3524_v26 = vpop.f32.mrb[53].mxu1  ;;  %2771 = vrot.lane.b32.xlu1 %v2747_v27, %s4200_s9  ;;  %v3555_v33 = vpop.f32.mrb[39].mxu0 }
 0x960   : > { %v2462_v51 = vpop.f32.mrb[54].mxu1  ;;  %v3239_v33 = vld [vmem:[%s5406_s15] ss:$0 sm:$0xff] (!%p3238_p10) }
 0x961   : > { %v3525_v34 = vpop.f32.mrb[55].mxu1  ;;  %2750 = vrot.lane.b32.xlu0 %v2742_v6, %s4201_s2 }
 0x962   : > { %v3240_v34 = vld [vmem:[%s5407_s27] ss:$0 sm:$0xff] (!%p3238_p10) }
 0x966   : > { %v2551_v60 = vpop.f32.mrb[56].mxu1 }
 0x967   : > { %v3536_v37 = vpop.f32.mrb[57].mxu1  ;;  %v2744_v40 = vpack.c.bf16 %v2551_v60, %v2551_v60 }
 0x968   : > { %v2554_v31 = vpop.f32.mrb[58].mxu1 }
 0x969   : > { %v3537_v3 = vpop.f32.mrb[59].mxu1 }
 0x96e   : > { %v2643_v30 = vpop.f32.mrb[60].mxu1 }
 0x96f   : > { %v2746_v5 = vpack.c.bf16 %v2643_v30, %v2643_v30  ;;  %v3548_v42 = vpop.f32.mrb[61].mxu1 }
 0x970   : > { %v2646_v41 = vpop.f32.mrb[62].mxu1 }
 0x971   : > { %2768 = vrot.lane.b32.xlu0 %v2746_v5, %s4201_s2  ;;  %v3549_v46 = vpop.f32.mrb[63].mxu1 }
 0x975   : > { %2753 = vrot.lane.b32.xlu0 %v2743_v47, %s4200_s9 }
 0x976   : > { %v2735_v63 = vpop.f32.mrb[64].mxu1 }
 0x977   : > { %v2748_v48 = vpack.c.bf16 %v2735_v63, %v2735_v63  ;;  %v3560_v36 = vpop.f32.mrb[65].mxu1 }
 0x978   : > { %v2738_v50 = vpop.f32.mrb[66].mxu1 }
 0x979   : > { %v3561_v38 = vpop.f32.mrb[67].mxu1  ;;  %2774 = vrot.lane.b32.xlu1 %v2748_v48, %s4199_s13 }
 0x97d   : > { %2756 = vrot.lane.b32.xlu1 %v2744_v40, %s4199_s13 }
 0x9d1   : > { %v2772_v55 = vpop.permute.xlu1 %2771 }
 0x9d3   : > { %v2751_v53 = vpop.permute.xlu0 %2750 }
 0x9d4   : > { %v2760_v61 = vsel %vm1090_vm3, %v2741_v2, %v2751_v53 }
 0x9e3   : > { %v2769_v15 = vpop.permute.xlu0 %2768 }
 0x9e4   : > { %v2778_v35 = vsel %vm1090_vm3, %v2745_v44, %v2769_v15 }
 0x9e5   : > { %v2780_v56 = vsel %vm2761_vm6, %v2778_v35, %v2772_v55 }
 0x9e7   : > { %v2754_v32 = vpop.permute.xlu0 %2753 }
 0x9e8   : > { %v2763_v62 = vsel %vm2761_vm6, %v2760_v61, %v2754_v32 }
 0x9eb   : > { %v2775_v57 = vpop.permute.xlu1 %2774 }
 0x9ec   : > { %v2782_v8 = vsel %vm2764_vm7, %v2780_v56, %v2775_v57 }
 0x9ed   : > { %v2784_v16 = vrot.slane %v2782_v8, 4 }
 0x9ef   : > { %v2757_v43 = vpop.permute.xlu1 %2756 }
 0x9f0   : > { %v2766_v54 = vsel %vm2764_vm7, %v2763_v62, %v2757_v43 }
 0x9f1   : > { %v2786_v11 = vsel %vm2007_vm4, %v2766_v54, %v2784_v16 }
 0x9f2   : > { %3579 = vmatmul.mubr.bf16.vlgmr.msra.gmra.mrb[40].mxu0 %v2786_v11 }
 0xac4   : > { %2900 = sbr.rel (%p3238_p10) target bundleno = 3084 (0xc0c), region = 92 }
 0xac5   : > { %v2886_v1 = vpop.f32.mrb[40].mxu0 }
 0xac6   : > { %v2893_v9 = vadd.f32 %v3866_v7, %v2886_v1  ;;  %v3580_v12 = vpop.f32.mrb[41].mxu0 }
 0xac7   : > { %v2889_v14 = vpop.f32.mrb[42].mxu0 }
 0xac8   : > { %2895 = vst [vmem:[#allocation3] sm:$0xff] %v2893_v9  ;;  %v2894_v0 = vadd.f32 %v3867_v17, %v2889_v14  ;;  %v3581_v4 = vpop.f32.mrb[43].mxu0 }
 0xaca   : > { %2896 = vst [vmem:[#allocation3 + $0x8] sm:$0xff] %v2894_v0 }
 0xacf   : > { %v2901_v10 = vld [vmem:[#allocation3] sm:$0xff] }
 0xad0   : > { %2905 = vadd.xlane.f32.xlu0 %v2901_v10 }
 0xad1   : > { %v2902_v18 = vld [vmem:[#allocation3 + $0x8] sm:$0xff] }
 0xad4   : > { %2907 = vadd.xlane.f32.xlu0 %v2902_v18 }
 0xb5d   : > { %v2906_v19 = vpop.xlane.xlu0 %2905 }
 0xb5e   : > { %v2909_v20 = vmul.f32 0.0078125, %v2906_v19 }
 0xb60   : > { %v2911_v45 = vsub.f32 %v2901_v10, %v2909_v20 }
 0xb61   : > { %v2908_v39 = vpop.xlane.xlu0 %2907 }
 0xb62   : > { %v2910_v21 = vmul.f32 0.0078125, %v2908_v39  ;;  %v2913_v22 = vmul.f32 %v2911_v45, %v2911_v45 }
 0xb64   : > { %v2912_v23 = vsub.f32 %v2902_v18, %v2910_v21  ;;  %2915 = vadd.xlane.f32.xlu1 %v2913_v22 }
 0xb66   : > { %v2914_v24 = vmul.f32 %v2912_v23, %v2912_v23 }
 0xb68   : > { %2917 = vadd.xlane.f32.xlu1 %v2914_v24 }
 0xbf1   : > { %v2916_v25 = vpop.xlane.xlu1 %2915 }
 0xbf2   : > { %v2919_v27 = vmul.f32 0.0078125, %v2916_v25 }
 0xbf4   : > { %v2921_v52 = vadd.f32 1e-05, %v2919_v27 }
 0xbf5   : > { %v2918_v28 = vpop.xlane.xlu1 %2917 }
 0xbf6   : > { %3868 = vrsqrt.f32 %v2921_v52  ;;  %v2920_v29 = vmul.f32 0.0078125, %v2918_v28 }
 0xbf8   : > { %v2922_v6 = vadd.f32 1e-05, %v2920_v29 }
 0xbfa   : > { %3870 = vrsqrt.f32 %v2922_v6 }
 0xc00   : > { %v3869_v26 = vpop.eup %3868 }
 0xc01   : > { %v2925_v51 = vmul.f32 %v3869_v26, %v2911_v45 }
 0xc03   : > { %v2933_v49 = vmul.f32 %v3239_v33, %v2925_v51 }
 0xc04   : > { %v3871_v60 = vpop.eup %3870 }
 0xc05   : > { %v2941_v59 = vadd.f32 %v3240_v34, %v2933_v49  ;;  %v2926_v37 = vmul.f32 %v3871_v60, %v2912_v23 }
 0xc07   : > { %2943 = vst [vmem:[%s4657_s28] sm:$0xff] %v2941_v59  ;;  %v2934_v31 = vmul.f32 %v3239_v33, %v2926_v37 }
 0xc09   : > { %v2942_v58 = vadd.f32 %v3240_v34, %v2934_v31 }
 0xc0b   : > { %2944 = vst [vmem:[%s4657_s28 + $0x8] sm:$0xff] %v2942_v58 }
 0xc0c PF: > { %s5408_s8 = sld [smem:[#allocation24_spill]]  ;;  %s5409_s10 = sld [smem:[#allocation37_spill]] }
 0xc0d   : > { %s2959_s29 = sshll.u32 %s4657_s28, 4  ;;  %s2946_s12 = scalar_lea.sflag [#allocation6], %s4620_s11  ;;  %s5250_s29 = int_to_ptr.vmem [resolvable:$true] %s2959_s29 }
 0xc0e   : > { %s4048_s13 = scalar_lea.vmem %s5250_s29, 256  ;;  %p5410_p4 = scmp.ne.s32.totalorder %s5386_s30, 0 }
 0xc0f   : > { %p4049_p9 = scmp.ne.s32.totalorder %s5250_s29, %s4048_s13  ;;  %s4202_s9 = smov [#allocation15]  }
 0xc10   : > { %s4052_s2 = sshll.u32 %s4202_s9, 4  ;;  %s4053_s2 = int_to_ptr.vmem [resolvable:$false] %s4052_s2 }
 0xc11   : > { %p4050_p5 = pnand %p4049_p9, %p5410_p4  ;;  %s4054_s20 = scalar_lea.vmem %s4053_s2, 512 }
 0xc12   : > { %s3250_s5 = sshll.u32 %s5408_s8, 8  ;;  %p4055_p3 = scmp.lt.s32.totalorder %s5250_s29, %s4053_s2 }
 0xc13   : > { %s5247_s0 = scalar_lea.hbm %s5409_s10, %s3250_s5  ;;  %p4051_p8 = pneg %p4050_p5 }
 0xc14   : > { %p4056_p13 = scmp.lt.s32.totalorder %s4054_s20, %s4048_s13 }
 0xc16   : > { %p4057_p1 = por %p4056_p13, %p4055_p3 }
 0xc18   : > { %p4058_p6 = pnand %p4057_p1, %p4051_p8 }
 0xc1a   : > { %4061 = shalt.err (!%p4058_p6)
}
 0xc1b   : > { %s4062_s28 = scalar_lea.hbm %s5247_s0, 256  ;;  %s4066_s15 = scalar_lea.hbm %s5409_s10, 512 }
 0xc1c   : > { %p4063_p0 = scmp.ne.s32.totalorder %s5247_s0, %s4062_s28  ;;  %p4067_p12 = scmp.lt.u32.totalorder %s5247_s0, %s5409_s10 }
 0xc1d   : > { %p4068_p11 = scmp.lt.u32.totalorder %s4066_s15, %s4062_s28  ;;  %p4070_p9 = scmp.lt.u32.totalorder %s4062_s28, %s5247_s0 }
 0xc1e   : > { %p4064_p7 = pnand %p4063_p0, %p5410_p4 }
 0xc1f   : > { %p4069_p10 = por %p4068_p11, %p4067_p12 }
 0xc20   : > { %p4065_p2 = pneg %p4064_p7 }
 0xc21   : > { %p4071_p5 = por %p4070_p9, %p4069_p10 }
 0xc23   : > { %p4072_p8 = pnand %p4071_p5, %p4065_p2 }
 0xc25   : > { %4075 = shalt.err (!%p4072_p8)
}
 0xc26   : > { %s4203_s27 = smov 128   ;;  %s4204_s8 = smov 8  }
 0xc27   : > { %3630 = dma.vmem_to_hbm [thread:$0]  (%p5410_p4), %s5250_s29, 256, %s5247_s0, %s2946_s12, %s4203_s27, %s4203_s27, %s4204_s8  }
 0xc28 PF: > { %s5411_s5 = sld [smem:[#allocation22_spill]]  ;;  %s5412_s19 = sld [smem:[#allocation26_spill]] }
 0xc29   : > { %p3661_p3 = scmp.ge.s32.totalorder %s4182_s23, 2 }
 0xc2e   : > { %s2974_s1 = sand.u32 1, %s5411_s5   ;;  %p5413_p13 = scmp.ne.s32.totalorder %s5412_s19, 0 }
 0xc2f   : > { %s2975_s13 = scalar_lea.sflag [#allocation6], %s2974_s1 }
 0xc30   : > { %p3653_p1 = pnand %p3661_p3, %p5413_p13 }
 0xc32   : > { %4137 = dma.done.wait (!%p3653_p1), %s2975_s13, 256  }
 0xc33   : > { %4139 = vsyncadd (!%p3653_p1), %s2975_s13, 4294967040  ;;  %s33_s23 = sadd.s32 1, %s4182_s23   ;;  %s5414_s9 = sld [smem:[#allocation21_spill]] }
 0xc34   : > { %p30_p6 = scmp.ge.s32.totalorder %s33_s23, 6   ;;  %s5415_s15 = sld [smem:[#allocation28_spill]] }
 0xc35   : > { %s5416_s30 = smov %s4510_s16  ;;  %s5417_s11 = sld [smem:[#allocation27_spill]] }
 0xc36   : > { %s5418_s13 = smov %s4146_s14  ;;  %s5420_s16 = smov %s4158_s17 }
 0xc37   : > { %s5421_s17 = smov %s4162_s18  ;;  %s5422_s18 = smov %s5416_s30 }
 0xc38   : > { %s5423_s19 = smov %s4174_s21  ;;  %s5424_s20 = smov %s4178_s22 }
 0xc39   : > { %s5419_s14 = smov %s5414_s9  ;;  %s5426_s22 = smov %s5432_s3 }
 0xc3a   :  { %32 = sbr.rel (!%p30_p6) target bundleno = 24 (0x18), region = 161 }
 0xc3b   : > { %s5425_s21 = smov %s5417_s11 }
 0xc41   :  { %2980 = vsyncpa [#allocation5], 1 }
 0xc42   :  { %2982 = vsyncpa [#allocation5 + $0x1], 1 }
 0xc43   :  { %2983 = vsyncpa [#allocation8], 1 }
 0xc44   :  { %2984 = vsyncpa [#allocation11], 1 }
 0xc45   :  { %2986 = vsyncpa [#allocation11 + $0x1], 1 }
 0xc46   :  { %2987 = vsyncpa [#allocation14], 1 }
 0xc47   :  { %2989 = vsyncpa [#allocation14 + $0x1], 1 }
 0xc48   :  { %2990 = vsyncpa [#allocation6], 1 }
 0xc49   :  { %2992 = vsyncpa [#allocation6 + $0x1], 1 }

</bundles_post_ra>
